<compile_context>
chip_gen: v6e
topology: v6e:2x2x1
jax: 0.10.0
libtpu: 0.0.40
codegen_flags: <defaults>
</compile_context>

<pallas_src>
import jax
import jax.numpy as jnp
from jax.experimental import pallas as pl
from jax.experimental.pallas import tpu as pltpu

NEURONS = 512
_SUBTILE = 16           # tile granularity for the batch dim (bf16 packing = 16 sublanes)
_FORCE_SPLIT_MIN = 256  # rounded batch size above which we guarantee >= 2 grid steps


def _round_up(x, m):
    return ((x + m - 1) // m) * m


def _device_kind():
    try:
        return jax.devices()[0].device_kind.lower()
    except Exception:
        return ""


def _default_elementwise_dtype():
    # v6e / v7x have a bf16 VALU path -> bias-add / ReLU in bf16 there.
    # v5e and older have no bf16 VPU -> keep f32 elementwise.
    kind = _device_kind()
    if ("v6" in kind) or ("v7" in kind):
        return jnp.bfloat16
    return jnp.float32


def _default_block_b():
    kind = _device_kind()
    if ("v6" in kind) or ("v7" in kind):
        return 2048
    return 1024


def mlp_temp_kernel(x_ref,
                    w1_ref, b1_ref,
                    w2_ref, b2_ref,
                    w3_ref, b3_ref,
                    w4_ref, b4_ref,
                    o_ref):
    """Fused fc1..fc4 forward for one batch tile.

    Weights are bf16 (MXU inputs), matmuls accumulate f32.  Bias-add + ReLU run
    in the bias dtype (bf16 on v6e/v7x, f32 on v5e); the result is cast to the
    next layer's weight dtype (no-op when already bf16).
    """
    def hidden(h_f32, b_ref, next_w_dtype):
        h = h_f32.astype(b_ref.dtype) + b_ref[...]
        h = jnp.maximum(h, 0.0)
        return h.astype(next_w_dtype)

    h = jnp.dot(x_ref[...], w1_ref[...], preferred_element_type=jnp.float32)
    h = hidden(h, b1_ref, w2_ref.dtype)
    h = jnp.dot(h, w2_ref[...], preferred_element_type=jnp.float32)
    h = hidden(h, b2_ref, w3_ref.dtype)
    h = jnp.dot(h, w3_ref[...], preferred_element_type=jnp.float32)
    h = hidden(h, b3_ref, w4_ref.dtype)
    out = jnp.dot(h, w4_ref[...], preferred_element_type=jnp.float32)
    o_ref[...] = (out + b4_ref[...]).astype(o_ref.dtype)


def mlp_temp_forward(x, params, *, block_b=None, weight_dtype=jnp.bfloat16,
                     elementwise_dtype=None, out_dtype=jnp.float32):
    """x: [B, input_dim] f32.  params: dict w1..w4 ([in,out]), b1..b4 ([1,out])."""
    B, input_dim = x.shape
    output_dim = params["w4"].shape[1]

    if block_b is None:
        block_b = _default_block_b()
    if elementwise_dtype is None:
        elementwise_dtype = _default_elementwise_dtype()

    # --- batch tiling -------------------------------------------------------
    b_ceil = _round_up(B, _SUBTILE)
    tb = min(_round_up(block_b, _SUBTILE), b_ceil)
    if b_ceil >= _FORCE_SPLIT_MIN:
        # Guarantee >= 2 grid steps so the "parallel" batch axis can be
        # sharded across v7x's two TensorCores (no-op on v5e/v6e).
        tb = min(tb, _round_up(pl.cdiv(b_ceil, 2), _SUBTILE))
    b_pad = _round_up(B, tb)           # multiple of tb by construction
    out_pad = _round_up(output_dim, 128)   # lane-dense output

    # --- operand prep (wrapper-side casts / padding) ------------------------
    x_p = x.astype(weight_dtype)
    if b_pad != B:
        x_p = jnp.pad(x_p, ((0, b_pad - B), (0, 0)))

    w1 = params["w1"].astype(weight_dtype)
    w2 = params["w2"].astype(weight_dtype)
    w3 = params["w3"].astype(weight_dtype)
    w4 = jnp.pad(params["w4"],
                 ((0, 0), (0, out_pad - output_dim))).astype(weight_dtype)
    b1 = params["b1"].astype(elementwise_dtype)
    b2 = params["b2"].astype(elementwise_dtype)
    b3 = params["b3"].astype(elementwise_dtype)
    b4 = jnp.pad(params["b4"],
                 ((0, 0), (0, out_pad - output_dim))).astype(jnp.float32)

    grid = (b_pad // tb,)

    in_specs = [
        pl.BlockSpec((tb, input_dim), lambda i: (i, 0)),          # x (batch-tiled)
        pl.BlockSpec((input_dim, NEURONS), lambda i: (0, 0)),     # w1 (VMEM-resident)
        pl.BlockSpec((1, NEURONS), lambda i: (0, 0)),             # b1
        pl.BlockSpec((NEURONS, NEURONS), lambda i: (0, 0)),       # w2
        pl.BlockSpec((1, NEURONS), lambda i: (0, 0)),             # b2
        pl.BlockSpec((NEURONS, NEURONS), lambda i: (0, 0)),       # w3
        pl.BlockSpec((1, NEURONS), lambda i: (0, 0)),             # b3
        pl.BlockSpec((NEURONS, out_pad), lambda i: (0, 0)),       # w4 (lane-padded)
        pl.BlockSpec((1, out_pad), lambda i: (0, 0)),             # b4 (lane-padded)
    ]
    out_spec = pl.BlockSpec((tb, out_pad), lambda i: (i, 0))

    # advisory cost estimate for the XLA scheduler
    itemsize = lambda a: a.size * jnp.dtype(a.dtype).itemsize
    flops = 2 * b_pad * (input_dim * NEURONS
                         + NEURONS * NEURONS * 2
                         + NEURONS * out_pad)
    bytes_accessed = (sum(itemsize(a) for a in (w1, w2, w3, w4, b1, b2, b3, b4))
                      + itemsize(x_p)
                      + b_pad * out_pad * jnp.dtype(out_dtype).itemsize)

    out = pl.pallas_call(
        mlp_temp_kernel,
        out_shape=jax.ShapeDtypeStruct((b_pad, out_pad), out_dtype),
        grid=grid,
        in_specs=in_specs,
        out_specs=out_spec,
        compiler_params=pltpu.CompilerParams(
            dimension_semantics=("parallel",)),
        cost_estimate=pl.CostEstimate(
            flops=flops, transcendentals=0, bytes_accessed=bytes_accessed),
    )(x_p, w1, b1, w2, b2, w3, b3, w4, b4)

    return out[:B, :output_dim]


def init_params(key, input_dim, output_dim):
    """Deterministic init mimicking nn.Linear default (uniform +-1/sqrt(fan_in)).

    Weights are [in, out] (transposed vs. PyTorch) so the kernel computes x @ W + b.
    """
    dims = [(input_dim, NEURONS), (NEURONS, NEURONS),
            (NEURONS, NEURONS), (NEURONS, output_dim)]
    params = {}
    for i, (fan_in, fan_out) in enumerate(dims, start=1):
        key, kw, kb = jax.random.split(key, 3)
        bound = 1.0 / jnp.sqrt(fan_in)
        params[f"w{i}"] = jax.random.uniform(
            kw, (fan_in, fan_out), jnp.float32, -bound, bound)
        params[f"b{i}"] = jax.random.uniform(
            kb, (1, fan_out), jnp.float32, -bound, bound)
    return params


def reference_forward(x, params, weight_dtype=jnp.bfloat16, elementwise_dtype=None):
    """Pure-JAX reference mirroring the kernel math exactly (bf16 MXU operands,
    f32 accumulate, bias/ReLU in elementwise_dtype)."""
    if elementwise_dtype is None:
        elementwise_dtype = _default_elementwise_dtype()
    wd = weight_dtype

    def hidden(h_f32, b):
        h = h_f32.astype(elementwise_dtype) + b.astype(elementwise_dtype)
        return jnp.maximum(h, 0.0).astype(wd)

    h = jnp.dot(x.astype(wd), params["w1"].astype(wd),
                preferred_element_type=jnp.float32)
    h = hidden(h, params["b1"])
    h = jnp.dot(h, params["w2"].astype(wd), preferred_element_type=jnp.float32)
    h = hidden(h, params["b2"])
    h = jnp.dot(h, params["w3"].astype(wd), preferred_element_type=jnp.float32)
    h = hidden(h, params["b3"])
    out = jnp.dot(h, params["w4"].astype(wd), preferred_element_type=jnp.float32)
    return out + params["b4"]


if __name__ == "__main__":
    key = jax.random.PRNGKey(0)
    input_dim, output_dim = 16, 4

    params = init_params(key, input_dim, output_dim)
    ew = _default_elementwise_dtype()   # bf16 on v6e/v7x, f32 on v5e & older

    # Case 1: tiny batch -> single grid step.
    key, kx = jax.random.split(key)
    x_small = jax.random.normal(kx, (8, input_dim), jnp.float32)
    out_small = jax.block_until_ready(mlp_temp_forward(x_small, params))
    ref_small = reference_forward(x_small, params, elementwise_dtype=ew)
    assert out_small.shape == (8, output_dim)
    assert jnp.allclose(out_small, ref_small, atol=1e-2, rtol=1e-2), \
        "mismatch vs reference (small batch)"

    # Case 2: explicit small tile -> batch padding + multi-step pipelined grid.
    key, kx = jax.random.split(key)
    x_tiled = jax.random.normal(kx, (40, input_dim), jnp.float32)
    out_tiled = jax.block_until_ready(
        mlp_temp_forward(x_tiled, params, block_b=16))
    ref_tiled = reference_forward(x_tiled, params, elementwise_dtype=ew)
    assert out_tiled.shape == (40, output_dim)
    assert jnp.allclose(out_tiled, ref_tiled, atol=1e-2, rtol=1e-2), \
        "mismatch vs reference (tiled batch)"

    # Case 3: large batch -> default tile, forced >=2-step split (megacore path).
    key, kx = jax.random.split(key)
    x_large = jax.random.normal(kx, (320, input_dim), jnp.float32)
    out_large = jax.block_until_ready(mlp_temp_forward(x_large, params))
    ref_large = reference_forward(x_large, params, elementwise_dtype=ew)
    assert out_large.shape == (320, output_dim)
    assert jnp.allclose(out_large, ref_large, atol=1e-2, rtol=1e-2), \
        "mismatch vs reference (large batch / megacore split)"

    print("KERNEL_OK")
</pallas_src>

<mosaic_0001>
module attributes {stable_mosaic.version = 11 : i64} {
  func.func @mlp_temp_kernel(%arg0: i32, %arg1: memref<16x16xbf16, #tpu.memory_space<vmem>>, %arg2: memref<16x512xbf16, #tpu.memory_space<vmem>>, %arg3: memref<1x512xf32, #tpu.memory_space<vmem>>, %arg4: memref<512x512xbf16, #tpu.memory_space<vmem>>, %arg5: memref<1x512xf32, #tpu.memory_space<vmem>>, %arg6: memref<512x512xbf16, #tpu.memory_space<vmem>>, %arg7: memref<1x512xf32, #tpu.memory_space<vmem>>, %arg8: memref<512x128xbf16, #tpu.memory_space<vmem>>, %arg9: memref<1x128xf32, #tpu.memory_space<vmem>>, %arg10: memref<16x128xf32, #tpu.memory_space<vmem>>) attributes {dimension_semantics = [#tpu.dimension_semantics<parallel>], iteration_bounds = array<i64: 1>, scalar_prefetch = 0 : i64, scratch_operands = 0 : i64, tpu.core_type = #tpu.core_type<tc>, window_params = [{transform_indices = @transform_0, window_bounds = array<i64: 16, 16>}, {pipeline_mode = #tpu.pipeline_mode<synchronous>, transform_indices = @transform_1, window_bounds = array<i64: 16, 512>}, {pipeline_mode = #tpu.pipeline_mode<synchronous>, transform_indices = @transform_2, window_bounds = array<i64: 1, 512>}, {pipeline_mode = #tpu.pipeline_mode<synchronous>, transform_indices = @transform_3, window_bounds = array<i64: 512, 512>}, {pipeline_mode = #tpu.pipeline_mode<synchronous>, transform_indices = @transform_4, window_bounds = array<i64: 1, 512>}, {pipeline_mode = #tpu.pipeline_mode<synchronous>, transform_indices = @transform_5, window_bounds = array<i64: 512, 512>}, {pipeline_mode = #tpu.pipeline_mode<synchronous>, transform_indices = @transform_6, window_bounds = array<i64: 1, 512>}, {pipeline_mode = #tpu.pipeline_mode<synchronous>, transform_indices = @transform_7, window_bounds = array<i64: 512, 128>}, {pipeline_mode = #tpu.pipeline_mode<synchronous>, transform_indices = @transform_8, window_bounds = array<i64: 1, 128>}, {transform_indices = @transform_9, window_bounds = array<i64: 16, 128>}]} {
    %c0 = arith.constant 0 : index
    %c0_0 = arith.constant 0 : index
    %0 = vector.load %arg1[%c0, %c0_0] : memref<16x16xbf16, #tpu.memory_space<vmem>>, vector<16x16xbf16>
    %c0_1 = arith.constant 0 : index
    %c0_2 = arith.constant 0 : index
    %1 = vector.load %arg2[%c0_1, %c0_2] : memref<16x512xbf16, #tpu.memory_space<vmem>>, vector<16x512xbf16>
    %cst = arith.constant dense<0.000000e+00> : vector<16x512xf32>
    %2 = tpu.matmul %0, %1, %cst {dimension_numbers = #tpu.dot_dimension_numbers<[1], [0], [0], [1], [0, 0, 1, 1], [], []>} : vector<16x16xbf16>, vector<16x512xbf16>, vector<16x512xf32> -> vector<16x512xf32>
    %c0_3 = arith.constant 0 : index
    %c0_4 = arith.constant 0 : index
    %3 = vector.load %arg3[%c0_3, %c0_4] : memref<1x512xf32, #tpu.memory_space<vmem>>, vector<1x512xf32>
    %4 = vector.broadcast %3 : vector<1x512xf32> to vector<16x512xf32>
    %5 = arith.addf %2, %4 : vector<16x512xf32>
    %cst_5 = arith.constant 0.000000e+00 : f32
    %6 = vector.broadcast %cst_5 : f32 to vector<16x512xf32>
    %7 = arith.maximumf %5, %6 : vector<16x512xf32>
    %8 = arith.truncf %7 : vector<16x512xf32> to vector<16x512xbf16>
    %c0_6 = arith.constant 0 : index
    %c0_7 = arith.constant 0 : index
    %9 = vector.load %arg4[%c0_6, %c0_7] : memref<512x512xbf16, #tpu.memory_space<vmem>>, vector<512x512xbf16>
    %cst_8 = arith.constant dense<0.000000e+00> : vector<16x512xf32>
    %10 = tpu.matmul %8, %9, %cst_8 {dimension_numbers = #tpu.dot_dimension_numbers<[1], [0], [0], [1], [0, 0, 1, 1], [], []>} : vector<16x512xbf16>, vector<512x512xbf16>, vector<16x512xf32> -> vector<16x512xf32>
    %c0_9 = arith.constant 0 : index
    %c0_10 = arith.constant 0 : index
    %11 = vector.load %arg5[%c0_9, %c0_10] : memref<1x512xf32, #tpu.memory_space<vmem>>, vector<1x512xf32>
    %12 = vector.broadcast %11 : vector<1x512xf32> to vector<16x512xf32>
    %13 = arith.addf %10, %12 : vector<16x512xf32>
    %cst_11 = arith.constant 0.000000e+00 : f32
    %14 = vector.broadcast %cst_11 : f32 to vector<16x512xf32>
    %15 = arith.maximumf %13, %14 : vector<16x512xf32>
    %16 = arith.truncf %15 : vector<16x512xf32> to vector<16x512xbf16>
    %c0_12 = arith.constant 0 : index
    %c0_13 = arith.constant 0 : index
    %17 = vector.load %arg6[%c0_12, %c0_13] : memref<512x512xbf16, #tpu.memory_space<vmem>>, vector<512x512xbf16>
    %cst_14 = arith.constant dense<0.000000e+00> : vector<16x512xf32>
    %18 = tpu.matmul %16, %17, %cst_14 {dimension_numbers = #tpu.dot_dimension_numbers<[1], [0], [0], [1], [0, 0, 1, 1], [], []>} : vector<16x512xbf16>, vector<512x512xbf16>, vector<16x512xf32> -> vector<16x512xf32>
    %c0_15 = arith.constant 0 : index
    %c0_16 = arith.constant 0 : index
    %19 = vector.load %arg7[%c0_15, %c0_16] : memref<1x512xf32, #tpu.memory_space<vmem>>, vector<1x512xf32>
    %20 = vector.broadcast %19 : vector<1x512xf32> to vector<16x512xf32>
    %21 = arith.addf %18, %20 : vector<16x512xf32>
    %cst_17 = arith.constant 0.000000e+00 : f32
    %22 = vector.broadcast %cst_17 : f32 to vector<16x512xf32>
    %23 = arith.maximumf %21, %22 : vector<16x512xf32>
    %24 = arith.truncf %23 : vector<16x512xf32> to vector<16x512xbf16>
    %c0_18 = arith.constant 0 : index
    %c0_19 = arith.constant 0 : index
    %25 = vector.load %arg8[%c0_18, %c0_19] : memref<512x128xbf16, #tpu.memory_space<vmem>>, vector<512x128xbf16>
    %cst_20 = arith.constant dense<0.000000e+00> : vector<16x128xf32>
    %26 = tpu.matmul %24, %25, %cst_20 {dimension_numbers = #tpu.dot_dimension_numbers<[1], [0], [0], [1], [0, 0, 1, 1], [], []>} : vector<16x512xbf16>, vector<512x128xbf16>, vector<16x128xf32> -> vector<16x128xf32>
    %c0_21 = arith.constant 0 : index
    %c0_22 = arith.constant 0 : index
    %27 = vector.load %arg9[%c0_21, %c0_22] : memref<1x128xf32, #tpu.memory_space<vmem>>, vector<1x128xf32>
    %28 = vector.broadcast %27 : vector<1x128xf32> to vector<16x128xf32>
    %29 = arith.addf %26, %28 : vector<16x128xf32>
    %c0_23 = arith.constant 0 : index
    %c0_24 = arith.constant 0 : index
    %30 = vector.load %arg10[%c0_23, %c0_24] : memref<16x128xf32, #tpu.memory_space<vmem>>, vector<16x128xf32>
    tpu.vector_store %arg10[%c0_23, %c0_24], %29 {strides = array<i32>} : memref<16x128xf32, #tpu.memory_space<vmem>>, vector<16x128xf32>,
    return
  }
  func.func @transform_0(%arg0: i32) -> (i32, i32) {
    %c0_i32 = arith.constant 0 : i32
    %c0_i32_0 = arith.constant 0 : i32
    return %arg0, %c0_i32 : i32, i32
  }
  func.func @transform_1(%arg0: i32) -> (i32, i32) {
    %c0_i32 = arith.constant 0 : i32
    %c0_i32_0 = arith.constant 0 : i32
    %c0_i32_1 = arith.constant 0 : i32
    return %c0_i32, %c0_i32_0 : i32, i32
  }
  func.func @transform_2(%arg0: i32) -> (i32, i32) {
    %c0_i32 = arith.constant 0 : i32
    %c0_i32_0 = arith.constant 0 : i32
    %c0_i32_1 = arith.constant 0 : i32
    return %c0_i32, %c0_i32_0 : i32, i32
  }
  func.func @transform_3(%arg0: i32) -> (i32, i32) {
    %c0_i32 = arith.constant 0 : i32
    %c0_i32_0 = arith.constant 0 : i32
    %c0_i32_1 = arith.constant 0 : i32
    return %c0_i32, %c0_i32_0 : i32, i32
  }
  func.func @transform_4(%arg0: i32) -> (i32, i32) {
    %c0_i32 = arith.constant 0 : i32
    %c0_i32_0 = arith.constant 0 : i32
    %c0_i32_1 = arith.constant 0 : i32
    return %c0_i32, %c0_i32_0 : i32, i32
  }
  func.func @transform_5(%arg0: i32) -> (i32, i32) {
    %c0_i32 = arith.constant 0 : i32
    %c0_i32_0 = arith.constant 0 : i32
    %c0_i32_1 = arith.constant 0 : i32
    return %c0_i32, %c0_i32_0 : i32, i32
  }
  func.func @transform_6(%arg0: i32) -> (i32, i32) {
    %c0_i32 = arith.constant 0 : i32
    %c0_i32_0 = arith.constant 0 : i32
    %c0_i32_1 = arith.constant 0 : i32
    return %c0_i32, %c0_i32_0 : i32, i32
  }
  func.func @transform_7(%arg0: i32) -> (i32, i32) {
    %c0_i32 = arith.constant 0 : i32
    %c0_i32_0 = arith.constant 0 : i32
    %c0_i32_1 = arith.constant 0 : i32
    return %c0_i32, %c0_i32_0 : i32, i32
  }
  func.func @transform_8(%arg0: i32) -> (i32, i32) {
    %c0_i32 = arith.constant 0 : i32
    %c0_i32_0 = arith.constant 0 : i32
    %c0_i32_1 = arith.constant 0 : i32
    return %c0_i32, %c0_i32_0 : i32, i32
  }
  func.func @transform_9(%arg0: i32) -> (i32, i32) {
    %c0_i32 = arith.constant 0 : i32
    %c0_i32_0 = arith.constant 0 : i32
    return %arg0, %c0_i32 : i32, i32
  }
}

</mosaic_0001>

<bundles_post_ra>
// kernel: tpu_custom_call.1
= control target key start
LH: loop header
LB: loop body
LE: loop exit
PB: predicated region body
PF: predicated region fallthrough
CT: control target
= control target key end

     0   :  { %14 = vsyncpa [#allocation3], 0  ;;  %s3662_s0 = inlined_call_operand.hbm [shape: bf16[16,16], index: 0, kind: input, shape index: {}]   ;;  %s3663_s1 = inlined_call_operand.hbm [shape: bf16[16,512], index: 1, kind: input, shape index: {}]   ;;  %s3664_s2 = inlined_call_operand.hbm [shape: f32[1,512], index: 2, kind: input, shape index: {}]   ;;  %s3665_s3 = inlined_call_operand.hbm [shape: bf16[512,512], index: 3, kind: input, shape index: {}]   ;;  %s3666_s4 = inlined_call_operand.vmem [shape: f32[1,512], index: 4, kind: input, shape index: {}]   ;;  %s3667_s5 = inlined_call_operand.hbm [shape: bf16[512,512], index: 5, kind: input, shape index: {}]   ;;  %s3668_s6 = inlined_call_operand.vmem [shape: f32[1,512], index: 6, kind: input, shape index: {}]   ;;  %s3669_s7 = inlined_call_operand.hbm [shape: bf16[512,128], index: 7, kind: input, shape index: {}]   ;;  %s3670_s8 = inlined_call_operand.vmem [shape: f32[1,128], index: 8, kind: input, shape index: {}]   ;;  %s3671_s9 = inlined_call_operand.hbm [shape: f32[16,128], index: 9, kind: output, shape index: {}]  }
   0x1   :  { %15 = vsyncpa [#allocation6], 0 }
   0x2   :  { %16 = vsyncpa [#allocation9], 0 }
   0x3   :  { %17 = vsyncpa [#allocation12], 0 }
   0x4   :  { %18 = vsyncpa [#allocation4], 0  ;;  %s3511_s30 = smov [#allocation5]  }
   0x5   :  { %s36_s10 = sshll.u32 %s3511_s30, 4  ;;  %s37_s10 = int_to_ptr.vmem [resolvable:$true] %s36_s10 }
   0x6   :  { %s3369_s11 = scalar_lea.vmem %s37_s10, 512  ;;  %p3374_p1 = scmp.lt.s32.totalorder %s37_s10, %s37_s10 }
   0x7   :  { %p3370_p0 = scmp.ne.s32.totalorder %s37_s10, %s3369_s11  ;;  %p3375_p2 = scmp.lt.s32.totalorder %s3369_s11, %s3369_s11 }
   0x9   :  { %p3376_p3 = por %p3375_p2, %p3374_p1 }
   0xb   :  { %p3377_p4 = pnand %p3376_p3, %p3370_p0 }
   0xd   :  { %3380 = shalt.err (!%p3377_p4)
}
   0xe   :  { %s3512_s12 = smov 256   ;;  %s3513_s13 = smov 16  }
   0xf   :  { %42 = dma.hbm_to_vmem [thread:$0]  %s3663_s1, 512, %s37_s10, [#allocation6], %s3512_s12, %s3512_s12, %s3513_s13  }
  0x10   :  { %s3514_s16 = smov [#allocation8]   ;;  %s3515_s18 = smov [#allocation2]  }
  0x11   :  { %s58_s17 = sshll.u32 %s3514_s16, 4  ;;  %s24_s19 = sshll.u32 %s3515_s18, 4  ;;  %s59_s17 = int_to_ptr.vmem [resolvable:$true] %s58_s17  ;;  %s25_s19 = int_to_ptr.vmem [resolvable:$true] %s24_s19 }
  0x12   :  { %s3389_s20 = scalar_lea.vmem %s59_s17, 16384  ;;  %p3394_p6 = scmp.lt.s32.totalorder %s59_s17, %s59_s17 }
  0x13   :  { %p3390_p5 = scmp.ne.s32.totalorder %s59_s17, %s3389_s20  ;;  %p3395_p7 = scmp.lt.s32.totalorder %s3389_s20, %s3389_s20 }
  0x15   :  { %p3396_p8 = por %p3395_p7, %p3394_p6 }
  0x17   :  { %p3397_p9 = pnand %p3396_p8, %p3390_p5 }
  0x19   :  { %3400 = shalt.err (!%p3397_p9)
}
  0x1a   :  { %64 = dma.hbm_to_vmem [thread:$0]  %s3665_s3, 16384, %s59_s17, [#allocation9], %s3512_s12, %s3512_s12, %s3513_s13  }
  0x1b   :  { %s3409_s1 = scalar_lea.vmem %s25_s19, 128  ;;  %p3414_p11 = scmp.lt.s32.totalorder %s25_s19, %s25_s19 }
  0x1c   :  { %p3410_p10 = scmp.ne.s32.totalorder %s25_s19, %s3409_s1  ;;  %p3415_p12 = scmp.lt.s32.totalorder %s3409_s1, %s3409_s1 }
  0x1e   :  { %p3416_p13 = por %p3415_p12, %p3414_p11 }
  0x20   :  { %p3417_p0 = pnand %p3416_p13, %p3410_p10 }
  0x22   :  { %3420 = shalt.err (!%p3417_p0)
}
  0x23   :  { %s3516_s23 = smov 64   ;;  %s3517_s24 = smov 4  }
  0x24   :  { %30 = dma.hbm_to_vmem [thread:$0]  %s3662_s0, 128, %s25_s19, [#allocation3], %s3516_s23, %s3516_s23, %s3517_s24  }
  0x25   :  { %s3518_s27 = smov [#allocation7]   ;;  %s3519_s3 = smov [#allocation10]  }
  0x26   :  { %s49_s28 = sshll.u32 %s3518_s27, 4  ;;  %s72_s29 = sshll.u32 %s3519_s3, 4  ;;  %s50_s28 = int_to_ptr.vmem [resolvable:$true] %s49_s28  ;;  %s73_s29 = int_to_ptr.vmem [resolvable:$true] %s72_s29 }
  0x27   :  { %s3429_s30 = scalar_lea.vmem %s50_s28, 64  ;;  %p3434_p2 = scmp.lt.s32.totalorder %s50_s28, %s50_s28 }
  0x28   :  { %p3430_p1 = scmp.ne.s32.totalorder %s50_s28, %s3429_s30  ;;  %p3435_p3 = scmp.lt.s32.totalorder %s3429_s30, %s3429_s30 }
  0x2a   :  { %p3436_p4 = por %p3435_p3, %p3434_p2 }
  0x2c   :  { %p3437_p5 = pnand %p3436_p4, %p3430_p1 }
  0x2e   :  { %3440 = shalt.err (!%p3437_p5)
}
  0x2f   :  { %52 = dma.hbm_to_vmem [thread:$0]  %s3664_s2, 64, %s50_s28, [#allocation6]  }
  0x30   :  { %s3449_s14 = scalar_lea.vmem %s73_s29, 16384  ;;  %p3454_p7 = scmp.lt.s32.totalorder %s73_s29, %s73_s29 }
  0x31   :  { %p3450_p6 = scmp.ne.s32.totalorder %s73_s29, %s3449_s14  ;;  %p3455_p8 = scmp.lt.s32.totalorder %s3449_s14, %s3449_s14 }
  0x33   :  { %p3456_p9 = por %p3455_p8, %p3454_p7 }
  0x35   :  { %p3457_p10 = pnand %p3456_p9, %p3450_p6 }
  0x37   :  { %3460 = shalt.err (!%p3457_p10)
}
  0x38   :  { %78 = dma.hbm_to_vmem [thread:$0]  %s3667_s5, 16384, %s73_s29, [#allocation9], %s3512_s12, %s3512_s12, %s3513_s13  }
  0x39   :  { %s3520_s16 = smov [#allocation11]  }
  0x3a   :  { %s86_s17 = sshll.u32 %s3520_s16, 4  ;;  %s87_s17 = int_to_ptr.vmem [resolvable:$true] %s86_s17 }
  0x3b   :  { %s3469_s18 = scalar_lea.vmem %s87_s17, 4096  ;;  %p3474_p12 = scmp.lt.s32.totalorder %s87_s17, %s87_s17 }
  0x3c   :  { %p3470_p11 = scmp.ne.s32.totalorder %s87_s17, %s3469_s18  ;;  %p3475_p13 = scmp.lt.s32.totalorder %s3469_s18, %s3469_s18 }
  0x3e   :  { %p3476_p0 = por %p3475_p13, %p3474_p12 }
  0x40   :  { %p3477_p1 = pnand %p3476_p0, %p3470_p11 }
  0x42   :  { %3480 = shalt.err (!%p3477_p1)
}
  0x43   :  { %92 = dma.hbm_to_vmem [thread:$0]  %s3669_s7, 4096, %s87_s17, [#allocation12], %s3516_s23, %s3516_s23, %s3517_s24  }
  0x44   :  { %3501 = dma.done.wait [#allocation3], 128  }
  0x45   :  { %3502 = vsyncadd [#allocation3], 4294967168 }
  0x46   :  { %3503 = dma.done.wait [#allocation6], 576  }
  0x47   :  { %3504 = vsyncadd [#allocation6], 4294966720 }
  0x48   :  { %3505 = dma.done.wait [#allocation9], 32768  }
  0x49   :  { %3506 = vsyncadd [#allocation9], 4294934528 }
  0x4a   :  { %3507 = dma.done.wait [#allocation12], 4096  }
  0x4b   :  { %3508 = vsyncadd [#allocation12], 4294963200  ;;  %v3521_v0 = vmov 0   ;;  %v2938_v1 = vld [vmem:[#allocation5 + $0x4] ss:$16 sps:$4 sm:$0xff]   ;;  %v2944_v5 = vld [vmem:[#allocation2] sm:$0xff]  }
  0x4c   :  { %203 = vmatprep.mubr.bf16.mxu0 %v3521_v0  ;;  %246 = vmatprep.mubr.bf16.mxu1 %v3521_v0  ;;  %v2940_v2 = vld [vmem:[#allocation5 + $0xc] ss:$16 sps:$4 sm:$0xff]   ;;  %v2942_v3 = vld [vmem:[#allocation5] ss:$16 sps:$4 sm:$0xff]   ;;  %v2943_v4 = vld [vmem:[#allocation5 + $0x8] ss:$16 sps:$4 sm:$0xff]  }
  0x4d   :  { %185 = vmatprep.subr.bf16.mxu0 %v2938_v1  ;;  %228 = vmatprep.subr.bf16.mxu1 %v2940_v2  ;;  %vm167_vm0 = vcmask 130048   ;;  %v2945_v6 = vld [vmem:[#allocation8 + $0xe0] ss:$16 sps:$4 sm:$0xff]   ;;  %v2947_v7 = vld [vmem:[#allocation8 + $0xe4] ss:$16 sps:$4 sm:$0xff]   ;;  %s3522_s20 = smov [#allocation13]  }
  0x4e   :  { %186 = vmatpush1.bf16.msra.mxu0 %v2942_v3  ;;  %229 = vmatpush1.bf16.msra.mxu1 %v2943_v4  ;;  %v2948_v8 = vld [vmem:[#allocation8 + $0x2e0] ss:$16 sps:$4 sm:$0xff]   ;;  %v2950_v9 = vld [vmem:[#allocation8 + $0x2e4] ss:$16 sps:$4 sm:$0xff]   ;;  %s2569_s21 = sshll.u32 %s3522_s20, 4  ;;  %s2570_s21 = int_to_ptr.vmem [resolvable:$true] %s2569_s21 }
  0x4f   :  { %1059 = vmatprep.subr.bf16.mxu0 %v2947_v7  ;;  %v2953_v10 = vld [vmem:[#allocation8 + $0xc4] ss:$16 sps:$4 sm:$0xff]   ;;  %1102 = vmatprep.subr.bf16.mxu1 %v2950_v9  ;;  %v2951_v11 = vld [vmem:[#allocation8 + $0xc0] ss:$16 sps:$4 sm:$0xff]   ;;  %v3046_v7 = vld [vmem:[#allocation8 + $0x2ec] ss:$16 sps:$4 sm:$0xff]   ;;  %p3486_p3 = scmp.lt.s32.totalorder %s2570_s21, %s2570_s21 }
  0x50   :  { %v2956_v12 = vld [vmem:[#allocation8 + $0x2c4] ss:$16 sps:$4 sm:$0xff]   ;;  %v2954_v13 = vld [vmem:[#allocation8 + $0x2c0] ss:$16 sps:$4 sm:$0xff]   ;;  %s3481_s22 = scalar_lea.vmem %s2570_s21, 256 }
  0x51   :  { %2589 = vmatmul.mubr.msk.bf16.vlgmr.msra.gmra.mxu0 %vm167_vm0, %v2944_v5  ;;  %2590 = vmatmul.mubr.msk.bf16.vlgmr.msra.gmra.mxu1 %vm167_vm0, %v2944_v5  ;;  %v2959_v14 = vld [vmem:[#allocation8 + $0xa4] ss:$16 sps:$4 sm:$0xff]   ;;  %v2957_v16 = vld [vmem:[#allocation8 + $0xa0] ss:$16 sps:$4 sm:$0xff]   ;;  %p3482_p2 = scmp.ne.s32.totalorder %s2570_s21, %s3481_s22  ;;  %p3487_p4 = scmp.lt.s32.totalorder %s3481_s22, %s3481_s22 }
  0x52   :  { %1060 = vmatpush1.bf16.msra.mxu0 %v2945_v6  ;;  %1103 = vmatpush1.bf16.msra.mxu1 %v2948_v8  ;;  %v2962_v15 = vld [vmem:[#allocation8 + $0x2a4] ss:$16 sps:$4 sm:$0xff]   ;;  %v2960_v17 = vld [vmem:[#allocation8 + $0x2a0] ss:$16 sps:$4 sm:$0xff]   ;;  %v3043_v6 = vld [vmem:[#allocation8 + $0xec] ss:$16 sps:$4 sm:$0xff]   ;;  %v122_v8 = vlaneseq }
  0x53   :  { %1061 = vmatprep.subr.bf16.mxu0 %v2953_v10  ;;  %1104 = vmatprep.subr.bf16.mxu1 %v2956_v12  ;;  %v2965_v18 = vld [vmem:[#allocation8 + $0x84] ss:$16 sps:$4 sm:$0xff]   ;;  %v2963_v20 = vld [vmem:[#allocation8 + $0x80] ss:$16 sps:$4 sm:$0xff]   ;;  %p3488_p5 = por %p3487_p4, %p3486_p3 }
  0x54   :  { %v2968_v19 = vld [vmem:[#allocation8 + $0x284] ss:$16 sps:$4 sm:$0xff]   ;;  %v2966_v21 = vld [vmem:[#allocation8 + $0x280] ss:$16 sps:$4 sm:$0xff]   ;;  %v123_v9 = vshrl.u32 %v122_v8, 7 }
  0x55   :  { %v2971_v22 = vld [vmem:[#allocation8 + $0x64] ss:$16 sps:$4 sm:$0xff]   ;;  %v2969_v24 = vld [vmem:[#allocation8 + $0x60] ss:$16 sps:$4 sm:$0xff]   ;;  %v3080_v8 = vld [vmem:[#allocation8 + $0x228] ss:$16 sps:$4 sm:$0xff]   ;;  %p3489_p6 = pnand %p3488_p5, %p3482_p2 }
  0x56   :  { %1062 = vmatpush1.bf16.msra.mxu0 %v2951_v11  ;;  %1105 = vmatpush1.bf16.msra.mxu1 %v2954_v13  ;;  %v2974_v23 = vld [vmem:[#allocation8 + $0x264] ss:$16 sps:$4 sm:$0xff]   ;;  %v2972_v25 = vld [vmem:[#allocation8 + $0x260] ss:$16 sps:$4 sm:$0xff]   ;;  %v3608_v10 = vsub.s32 1, %v123_v9  ;;  %v3610_v11 = vsub.s32 3, %v123_v9 }
  0x57   :  { %1063 = vmatprep.subr.bf16.mxu0 %v2959_v14  ;;  %1106 = vmatprep.subr.bf16.mxu1 %v2962_v15  ;;  %v2977_v26 = vld [vmem:[#allocation8 + $0x44] ss:$16 sps:$4 sm:$0xff]   ;;  %v2975_v28 = vld [vmem:[#allocation8 + $0x40] ss:$16 sps:$4 sm:$0xff]   ;;  %v3612_v12 = vsub.s32 0, %v123_v9  ;;  %v3614_v13 = vsub.s32 2, %v123_v9 }
  0x58   :  { %v2980_v27 = vld [vmem:[#allocation8 + $0x244] ss:$16 sps:$4 sm:$0xff]   ;;  %v2978_v29 = vld [vmem:[#allocation8 + $0x240] ss:$16 sps:$4 sm:$0xff]   ;;  %v120_v14 = vld [vmem:[#allocation7] sm:$0xf] }
  0x59   :  { %v2983_v30 = vld [vmem:[#allocation8 + $0x24] ss:$16 sps:$4 sm:$0xff]   ;;  %v2981_v32 = vld [vmem:[#allocation8 + $0x20] ss:$16 sps:$4 sm:$0xff]   ;;  %v3085_v9 = vld [vmem:[#allocation8 + $0xc] ss:$16 sps:$4 sm:$0xff]  }
  0x5a   :  { %1064 = vmatpush1.bf16.msra.mxu0 %v2957_v16  ;;  %1107 = vmatpush1.bf16.msra.mxu1 %v2960_v17  ;;  %v2986_v31 = vld [vmem:[#allocation8 + $0x224] ss:$16 sps:$4 sm:$0xff]   ;;  %v2984_v33 = vld [vmem:[#allocation8 + $0x220] ss:$16 sps:$4 sm:$0xff]   ;;  %v129_v17 = vrot.slane %v120_v14, %v3608_v10 }
  0x5b   :  { %1065 = vmatprep.subr.bf16.mxu0 %v2965_v18  ;;  %1108 = vmatprep.subr.bf16.mxu1 %v2968_v19  ;;  %v2989_v34 = vld [vmem:[#allocation8 + $0x4] ss:$16 sps:$4 sm:$0xff]   ;;  %v2987_v36 = vld [vmem:[#allocation8] ss:$16 sps:$4 sm:$0xff]   ;;  %v137_v18 = vrot.slane %v120_v14, %v3610_v11  ;;  %v125_v19 = vrot.slane %v120_v14, %v3612_v12 }
  0x5c   :  { %v2992_v35 = vld [vmem:[#allocation8 + $0x204] ss:$16 sps:$4 sm:$0xff]   ;;  %v2990_v37 = vld [vmem:[#allocation8 + $0x200] ss:$16 sps:$4 sm:$0xff]  }
  0x5d   :  { %v2995_v38 = vld [vmem:[#allocation8 + $0x1e4] ss:$16 sps:$4 sm:$0xff]   ;;  %v2993_v40 = vld [vmem:[#allocation8 + $0x1e0] ss:$16 sps:$4 sm:$0xff]  }
  0x5e   :  { %1066 = vmatpush1.bf16.msra.mxu0 %v2963_v20  ;;  %1109 = vmatpush1.bf16.msra.mxu1 %v2966_v21  ;;  %v2998_v39 = vld [vmem:[#allocation8 + $0x3e4] ss:$16 sps:$4 sm:$0xff]   ;;  %v2996_v41 = vld [vmem:[#allocation8 + $0x3e0] ss:$16 sps:$4 sm:$0xff]   ;;  %v133_v20 = vrot.slane %v120_v14, %v3614_v13  ;;  %v3088_v14 = vld [vmem:[#allocation8 + $0x20c] ss:$16 sps:$4 sm:$0xff]  }
  0x5f   :  { %1067 = vmatprep.subr.bf16.mxu0 %v2971_v22  ;;  %1110 = vmatprep.subr.bf16.mxu1 %v2974_v23  ;;  %v3001_v42 = vld [vmem:[#allocation8 + $0x1c4] ss:$16 sps:$4 sm:$0xff]   ;;  %v2999_v43 = vld [vmem:[#allocation8 + $0x1c0] ss:$16 sps:$4 sm:$0xff]  }
  0x60   :  { %v3004_v44 = vld [vmem:[#allocation8 + $0x3c4] ss:$16 sps:$4 sm:$0xff]   ;;  %v3002_v45 = vld [vmem:[#allocation8 + $0x3c0] ss:$16 sps:$4 sm:$0xff]  }
  0x61   :  { %v3007_v46 = vld [vmem:[#allocation8 + $0x1a4] ss:$16 sps:$4 sm:$0xff]   ;;  %v3005_v48 = vld [vmem:[#allocation8 + $0x1a0] ss:$16 sps:$4 sm:$0xff]  }
  0x62   :  { %1068 = vmatpush1.bf16.msra.mxu0 %v2969_v24  ;;  %1111 = vmatpush1.bf16.msra.mxu1 %v2972_v25  ;;  %v3010_v47 = vld [vmem:[#allocation8 + $0x3a4] ss:$16 sps:$4 sm:$0xff]   ;;  %v3008_v49 = vld [vmem:[#allocation8 + $0x3a0] ss:$16 sps:$4 sm:$0xff]  }
  0x63   :  { %1069 = vmatprep.subr.bf16.mxu0 %v2977_v26  ;;  %1112 = vmatprep.subr.bf16.mxu1 %v2980_v27  ;;  %v3013_v50 = vld [vmem:[#allocation8 + $0x184] ss:$16 sps:$4 sm:$0xff]   ;;  %v3011_v52 = vld [vmem:[#allocation8 + $0x180] ss:$16 sps:$4 sm:$0xff]  }
  0x64   :  { %v3016_v51 = vld [vmem:[#allocation8 + $0x384] ss:$16 sps:$4 sm:$0xff]   ;;  %v3014_v53 = vld [vmem:[#allocation8 + $0x380] ss:$16 sps:$4 sm:$0xff]  }
  0x65   :  { %v3019_v54 = vld [vmem:[#allocation8 + $0x164] ss:$16 sps:$4 sm:$0xff]   ;;  %v3017_v56 = vld [vmem:[#allocation8 + $0x160] ss:$16 sps:$4 sm:$0xff]  }
  0x66   :  { %1070 = vmatpush1.bf16.msra.mxu0 %v2975_v28  ;;  %1113 = vmatpush1.bf16.msra.mxu1 %v2978_v29  ;;  %v3022_v55 = vld [vmem:[#allocation8 + $0x364] ss:$16 sps:$4 sm:$0xff]   ;;  %v3020_v57 = vld [vmem:[#allocation8 + $0x360] ss:$16 sps:$4 sm:$0xff]  }
  0x67   :  { %1071 = vmatprep.subr.bf16.mxu0 %v2983_v30  ;;  %1114 = vmatprep.subr.bf16.mxu1 %v2986_v31  ;;  %v3025_v58 = vld [vmem:[#allocation8 + $0x144] ss:$16 sps:$4 sm:$0xff]   ;;  %v3023_v60 = vld [vmem:[#allocation8 + $0x140] ss:$16 sps:$4 sm:$0xff]  }
  0x68   :  { %v3028_v59 = vld [vmem:[#allocation8 + $0x344] ss:$16 sps:$4 sm:$0xff]   ;;  %v3026_v61 = vld [vmem:[#allocation8 + $0x340] ss:$16 sps:$4 sm:$0xff]  }
  0x69   :  { %v3031_v62 = vld [vmem:[#allocation8 + $0x124] ss:$16 sps:$4 sm:$0xff]   ;;  %v3029_v0 = vld [vmem:[#allocation8 + $0x120] ss:$16 sps:$4 sm:$0xff]  }
  0x6a   :  { %1072 = vmatpush1.bf16.msra.mxu0 %v2981_v32  ;;  %1115 = vmatpush1.bf16.msra.mxu1 %v2984_v33  ;;  %v3034_v63 = vld [vmem:[#allocation8 + $0x324] ss:$16 sps:$4 sm:$0xff]   ;;  %v3032_v1 = vld [vmem:[#allocation8 + $0x320] ss:$16 sps:$4 sm:$0xff]  }
  0x6b   :  { %1073 = vmatprep.subr.bf16.mxu0 %v2989_v34  ;;  %1116 = vmatprep.subr.bf16.mxu1 %v2992_v35  ;;  %v3037_v2 = vld [vmem:[#allocation8 + $0x104] ss:$16 sps:$4 sm:$0xff]   ;;  %v3035_v4 = vld [vmem:[#allocation8 + $0x100] ss:$16 sps:$4 sm:$0xff]  }
  0x6c   :  { %v3040_v3 = vld [vmem:[#allocation8 + $0x304] ss:$16 sps:$4 sm:$0xff]   ;;  %v3038_v5 = vld [vmem:[#allocation8 + $0x300] ss:$16 sps:$4 sm:$0xff]  }
  0x6e   :  { %1074 = vmatpush1.bf16.msra.mxu0 %v2987_v36  ;;  %1117 = vmatpush1.bf16.msra.mxu1 %v2990_v37 }
  0x6f   :  { %1075 = vmatprep.subr.bf16.mxu0 %v2995_v38  ;;  %1118 = vmatprep.subr.bf16.mxu1 %v2998_v39 }
  0x72   :  { %1076 = vmatpush2.bf16.msra.mxu0 %v2993_v40  ;;  %1119 = vmatpush2.bf16.msra.mxu1 %v2996_v41 }
  0x73   :  { %1077 = vmatprep.subr.bf16.mxu0 %v3001_v42  ;;  %1120 = vmatprep.subr.bf16.mxu1 %v3004_v44 }
  0x76   :  { %1078 = vmatpush2.bf16.msra.mxu0 %v2999_v43  ;;  %1121 = vmatpush2.bf16.msra.mxu1 %v3002_v45  ;;  %v3041_v45 = vld [vmem:[#allocation8 + $0xe8] ss:$16 sps:$4 sm:$0xff]  }
  0x77   :  { %1079 = vmatprep.subr.bf16.mxu0 %v3007_v46  ;;  %1122 = vmatprep.subr.bf16.mxu1 %v3010_v47  ;;  %v3044_v46 = vld [vmem:[#allocation8 + $0x2e8] ss:$16 sps:$4 sm:$0xff]  }
  0x7a   :  { %1080 = vmatpush2.bf16.msra.mxu0 %v3005_v48  ;;  %1123 = vmatpush2.bf16.msra.mxu1 %v3008_v49  ;;  %v3049_v49 = vld [vmem:[#allocation8 + $0xcc] ss:$16 sps:$4 sm:$0xff]  }
  0x7b   :  { %1081 = vmatprep.subr.bf16.mxu0 %v3013_v50  ;;  %1124 = vmatprep.subr.bf16.mxu1 %v3016_v51  ;;  %v3052_v50 = vld [vmem:[#allocation8 + $0x2cc] ss:$16 sps:$4 sm:$0xff]   ;;  %v3047_v51 = vld [vmem:[#allocation8 + $0xc8] ss:$16 sps:$4 sm:$0xff]  }
  0x7e   :  { %1082 = vmatpush2.bf16.msra.mxu0 %v3011_v52  ;;  %1125 = vmatpush2.bf16.msra.mxu1 %v3014_v53  ;;  %v3050_v52 = vld [vmem:[#allocation8 + $0x2c8] ss:$16 sps:$4 sm:$0xff]   ;;  %v3055_v53 = vld [vmem:[#allocation8 + $0xac] ss:$16 sps:$4 sm:$0xff]  }
  0x7f   :  { %1083 = vmatprep.subr.bf16.mxu0 %v3019_v54  ;;  %1126 = vmatprep.subr.bf16.mxu1 %v3022_v55  ;;  %v3058_v54 = vld [vmem:[#allocation8 + $0x2ac] ss:$16 sps:$4 sm:$0xff]   ;;  %v3053_v55 = vld [vmem:[#allocation8 + $0xa8] ss:$16 sps:$4 sm:$0xff]  }
  0x82   :  { %1084 = vmatpush2.bf16.msra.mxu0 %v3017_v56  ;;  %1127 = vmatpush2.bf16.msra.mxu1 %v3020_v57  ;;  %v3056_v56 = vld [vmem:[#allocation8 + $0x2a8] ss:$16 sps:$4 sm:$0xff]   ;;  %v3061_v57 = vld [vmem:[#allocation8 + $0x8c] ss:$16 sps:$4 sm:$0xff]  }
  0x83   :  { %1085 = vmatprep.subr.bf16.mxu0 %v3025_v58  ;;  %1128 = vmatprep.subr.bf16.mxu1 %v3028_v59  ;;  %v3064_v58 = vld [vmem:[#allocation8 + $0x28c] ss:$16 sps:$4 sm:$0xff]   ;;  %v3059_v59 = vld [vmem:[#allocation8 + $0x88] ss:$16 sps:$4 sm:$0xff]  }
  0x86   :  { %1086 = vmatpush2.bf16.msra.mxu0 %v3023_v60  ;;  %1129 = vmatpush2.bf16.msra.mxu1 %v3026_v61  ;;  %v3062_v60 = vld [vmem:[#allocation8 + $0x288] ss:$16 sps:$4 sm:$0xff]   ;;  %v3067_v61 = vld [vmem:[#allocation8 + $0x6c] ss:$16 sps:$4 sm:$0xff]  }
  0x87   :  { %1087 = vmatprep.subr.bf16.mxu0 %v3031_v62  ;;  %1130 = vmatprep.subr.bf16.mxu1 %v3034_v63  ;;  %v3070_v62 = vld [vmem:[#allocation8 + $0x26c] ss:$16 sps:$4 sm:$0xff]   ;;  %v3065_v63 = vld [vmem:[#allocation8 + $0x68] ss:$16 sps:$4 sm:$0xff]  }
  0x8a   :  { %1088 = vmatpush2.bf16.msra.mxu0 %v3029_v0  ;;  %1131 = vmatpush2.bf16.msra.mxu1 %v3032_v1  ;;  %v3068_v0 = vld [vmem:[#allocation8 + $0x268] ss:$16 sps:$4 sm:$0xff]   ;;  %v3073_v1 = vld [vmem:[#allocation8 + $0x4c] ss:$16 sps:$4 sm:$0xff]  }
  0x8b   :  { %1089 = vmatprep.subr.bf16.mxu0 %v3037_v2  ;;  %1132 = vmatprep.subr.bf16.mxu1 %v3040_v3  ;;  %v3076_v2 = vld [vmem:[#allocation8 + $0x24c] ss:$16 sps:$4 sm:$0xff]   ;;  %v3071_v3 = vld [vmem:[#allocation8 + $0x48] ss:$16 sps:$4 sm:$0xff]  }
  0x8e   :  { %1090 = vmatpush2.bf16.msra.mxu0 %v3035_v4  ;;  %1133 = vmatpush2.bf16.msra.mxu1 %v3038_v5  ;;  %v3074_v4 = vld [vmem:[#allocation8 + $0x248] ss:$16 sps:$4 sm:$0xff]   ;;  %v3079_v5 = vld [vmem:[#allocation8 + $0x2c] ss:$16 sps:$4 sm:$0xff]  }
  0x8f   :  { %1145 = vmatprep.subr.bf16.mxu0 %v3043_v6  ;;  %1188 = vmatprep.subr.bf16.mxu1 %v3046_v7  ;;  %v3082_v6 = vld [vmem:[#allocation8 + $0x22c] ss:$16 sps:$4 sm:$0xff]   ;;  %v3077_v7 = vld [vmem:[#allocation8 + $0x28] ss:$16 sps:$4 sm:$0xff]  }
 0x111   :  { %v205_v15 = vpop.f32.mrf.mxu0  ;;  %v248_v16 = vpop.f32.mrf.mxu1 }
 0x112   :  { %v206_v29 = vadd.f32 %v205_v15, %v125_v19  ;;  %v249_v30 = vadd.f32 %v248_v16, %v133_v20  ;;  %v3083_v15 = vld [vmem:[#allocation8 + $0x8] ss:$16 sps:$4 sm:$0xff]  }
 0x113   :  { %v207_v21 = vpop.f32.mrf.mxu0  ;;  %v250_v22 = vpop.f32.mrf.mxu1  ;;  %v3086_v16 = vld [vmem:[#allocation8 + $0x208] ss:$16 sps:$4 sm:$0xff]  }
 0x114   :  { %v208_v25 = vadd.f32 %v207_v21, %v129_v17  ;;  %v251_v26 = vadd.f32 %v250_v22, %v137_v18  ;;  %v257_v41 = vmax.f32 %v206_v29, 0.0  ;;  %v259_v42 = vmax.f32 %v249_v30, 0.0  ;;  %v3097_v21 = vld [vmem:[#allocation8 + $0x1cc] ss:$16 sps:$4 sm:$0xff]  }
 0x115   :  { %v209_v23 = vpop.f32.mrf.mxu0  ;;  %v252_v24 = vpop.f32.mrf.mxu1  ;;  %v3100_v22 = vld [vmem:[#allocation8 + $0x3cc] ss:$16 sps:$4 sm:$0xff]  }
 0x116   :  { %v210_v27 = vadd.f32 %v209_v23, %v125_v19  ;;  %v253_v28 = vadd.f32 %v252_v24, %v133_v20  ;;  %v258_v37 = vmax.f32 %v208_v25, 0.0  ;;  %v260_v38 = vmax.f32 %v251_v26, 0.0  ;;  %v3089_v19 = vld [vmem:[#allocation8 + $0x1e8] ss:$16 sps:$4 sm:$0xff]   ;;  %v3103_v25 = vld [vmem:[#allocation8 + $0x1ac] ss:$16 sps:$4 sm:$0xff]  }
 0x117   :  { %v211_v31 = vpop.f32.mrf.mxu0  ;;  %v254_v32 = vpop.f32.mrf.mxu1  ;;  %v3092_v20 = vld [vmem:[#allocation8 + $0x3e8] ss:$16 sps:$4 sm:$0xff]   ;;  %v3106_v26 = vld [vmem:[#allocation8 + $0x3ac] ss:$16 sps:$4 sm:$0xff]  }
 0x118   :  { %v212_v33 = vadd.f32 %v211_v31, %v129_v17  ;;  %v255_v34 = vadd.f32 %v254_v32, %v137_v18  ;;  %v261_v35 = vmax.f32 %v210_v27, 0.0  ;;  %v263_v36 = vmax.f32 %v253_v28, 0.0  ;;  %v3091_v17 = vld [vmem:[#allocation8 + $0x1ec] ss:$16 sps:$4 sm:$0xff]   ;;  %v3095_v23 = vld [vmem:[#allocation8 + $0x1c8] ss:$16 sps:$4 sm:$0xff]  }
 0x119   :  { %v3094_v18 = vld [vmem:[#allocation8 + $0x3ec] ss:$16 sps:$4 sm:$0xff]   ;;  %v3098_v24 = vld [vmem:[#allocation8 + $0x3c8] ss:$16 sps:$4 sm:$0xff]  }
 0x11a   :  { %v262_v39 = vmax.f32 %v212_v33, 0.0  ;;  %v264_v40 = vmax.f32 %v255_v34, 0.0  ;;  %v3620_v47 = vpack.c.bf16 %v261_v35, %v257_v41  ;;  %v3622_v48 = vpack.c.bf16 %v263_v36, %v259_v42  ;;  %v3101_v27 = vld [vmem:[#allocation8 + $0x1a8] ss:$16 sps:$4 sm:$0xff]   ;;  %v3109_v29 = vld [vmem:[#allocation8 + $0x18c] ss:$16 sps:$4 sm:$0xff]  }
 0x11b   :  { %v3104_v28 = vld [vmem:[#allocation8 + $0x3a8] ss:$16 sps:$4 sm:$0xff]   ;;  %v3112_v30 = vld [vmem:[#allocation8 + $0x38c] ss:$16 sps:$4 sm:$0xff]  }
 0x11c   :  { %v266_v43 = vpack.c.bf16 %v262_v39, %v258_v37  ;;  %v268_v44 = vpack.c.bf16 %v264_v40, %v260_v38  ;;  %v3107_v31 = vld [vmem:[#allocation8 + $0x188] ss:$16 sps:$4 sm:$0xff]   ;;  %v3115_v33 = vld [vmem:[#allocation8 + $0x16c] ss:$16 sps:$4 sm:$0xff]  }
 0x11d   :  { %v3110_v32 = vld [vmem:[#allocation8 + $0x388] ss:$16 sps:$4 sm:$0xff]   ;;  %v3118_v34 = vld [vmem:[#allocation8 + $0x36c] ss:$16 sps:$4 sm:$0xff]  }
 0x11e   :  { %1091 = vmatprep.mubr.bf16.mxu0 %v266_v43  ;;  %1134 = vmatprep.mubr.bf16.mxu1 %v268_v44  ;;  %v3113_v35 = vld [vmem:[#allocation8 + $0x168] ss:$16 sps:$4 sm:$0xff]   ;;  %v3121_v37 = vld [vmem:[#allocation8 + $0x14c] ss:$16 sps:$4 sm:$0xff]  }
 0x11f   :  { %1092 = vmatmul.mubr.bf16.vlgmr.msra.gmra.mxu0 %v3620_v47  ;;  %1135 = vmatmul.mubr.bf16.vlgmr.msra.gmra.mxu1 %v3622_v48  ;;  %v3116_v36 = vld [vmem:[#allocation8 + $0x368] ss:$16 sps:$4 sm:$0xff]   ;;  %v3124_v38 = vld [vmem:[#allocation8 + $0x34c] ss:$16 sps:$4 sm:$0xff]  }
 0x120   :  { %1146 = vmatpush1.bf16.msra.mxu0 %v3041_v45  ;;  %1189 = vmatpush1.bf16.msra.mxu1 %v3044_v46  ;;  %v3119_v39 = vld [vmem:[#allocation8 + $0x148] ss:$16 sps:$4 sm:$0xff]   ;;  %v3127_v41 = vld [vmem:[#allocation8 + $0x12c] ss:$16 sps:$4 sm:$0xff]  }
 0x121   :  { %1177 = vmatprep.mubr.bf16.mxu0 %v266_v43  ;;  %1220 = vmatprep.mubr.bf16.mxu1 %v268_v44  ;;  %v3122_v40 = vld [vmem:[#allocation8 + $0x348] ss:$16 sps:$4 sm:$0xff]   ;;  %v3130_v42 = vld [vmem:[#allocation8 + $0x32c] ss:$16 sps:$4 sm:$0xff]  }
 0x122   :  { %1147 = vmatprep.subr.bf16.mxu0 %v3049_v49  ;;  %1190 = vmatprep.subr.bf16.mxu1 %v3052_v50  ;;  %v3125_v43 = vld [vmem:[#allocation8 + $0x128] ss:$16 sps:$4 sm:$0xff]   ;;  %v3133_v45 = vld [vmem:[#allocation8 + $0x10c] ss:$16 sps:$4 sm:$0xff]  }
 0x123   :  { %v3128_v44 = vld [vmem:[#allocation8 + $0x328] ss:$16 sps:$4 sm:$0xff]   ;;  %v3136_v46 = vld [vmem:[#allocation8 + $0x30c] ss:$16 sps:$4 sm:$0xff]  }
 0x124   :  { %1148 = vmatpush1.bf16.msra.mxu0 %v3047_v51  ;;  %1191 = vmatpush1.bf16.msra.mxu1 %v3050_v52  ;;  %v3131_v49 = vld [vmem:[#allocation8 + $0x108] ss:$16 sps:$4 sm:$0xff]   ;;  %v3139_v51 = vld [vmem:[#allocation10 + $0xe4] ss:$16 sps:$4 sm:$0xff]   ;;  %v3137_v52 = vld [vmem:[#allocation10 + $0xe0] ss:$16 sps:$4 sm:$0xff]  }
 0x125   :  { %1149 = vmatprep.subr.bf16.mxu0 %v3055_v53  ;;  %1192 = vmatprep.subr.bf16.mxu1 %v3058_v54  ;;  %v3134_v50 = vld [vmem:[#allocation8 + $0x308] ss:$16 sps:$4 sm:$0xff]   ;;  %v3142_v53 = vld [vmem:[#allocation10 + $0xc4] ss:$16 sps:$4 sm:$0xff]   ;;  %v3140_v54 = vld [vmem:[#allocation10 + $0xc0] ss:$16 sps:$4 sm:$0xff]  }
 0x128   :  { %1150 = vmatpush1.bf16.msra.mxu0 %v3053_v55  ;;  %1193 = vmatpush1.bf16.msra.mxu1 %v3056_v56  ;;  %v3145_v55 = vld [vmem:[#allocation10 + $0xa4] ss:$16 sps:$4 sm:$0xff]   ;;  %v3143_v56 = vld [vmem:[#allocation10 + $0xa0] ss:$16 sps:$4 sm:$0xff]  }
 0x129   :  { %1151 = vmatprep.subr.bf16.mxu0 %v3061_v57  ;;  %1194 = vmatprep.subr.bf16.mxu1 %v3064_v58  ;;  %v3148_v57 = vld [vmem:[#allocation10 + $0x84] ss:$16 sps:$4 sm:$0xff]   ;;  %v3146_v58 = vld [vmem:[#allocation10 + $0x80] ss:$16 sps:$4 sm:$0xff]  }
 0x12c   :  { %1152 = vmatpush1.bf16.msra.mxu0 %v3059_v59  ;;  %1195 = vmatpush1.bf16.msra.mxu1 %v3062_v60  ;;  %v3151_v59 = vld [vmem:[#allocation10 + $0x64] ss:$16 sps:$4 sm:$0xff]   ;;  %v3149_v60 = vld [vmem:[#allocation10 + $0x60] ss:$16 sps:$4 sm:$0xff]  }
 0x12d   :  { %1153 = vmatprep.subr.bf16.mxu0 %v3067_v61  ;;  %1196 = vmatprep.subr.bf16.mxu1 %v3070_v62  ;;  %v3185_v61 = vld [vmem:[#allocation10 + $0x2e0] ss:$16 sps:$4 sm:$0xff]   ;;  %v3187_v62 = vld [vmem:[#allocation10 + $0x2e4] ss:$16 sps:$4 sm:$0xff]  }
 0x130   :  { %1154 = vmatpush1.bf16.msra.mxu0 %v3065_v63  ;;  %1197 = vmatpush1.bf16.msra.mxu1 %v3068_v0  ;;  %v3191_v63 = vld [vmem:[#allocation10 + $0x2c0] ss:$16 sps:$4 sm:$0xff]   ;;  %v3193_v0 = vld [vmem:[#allocation10 + $0x2c4] ss:$16 sps:$4 sm:$0xff]  }
 0x131   :  { %1155 = vmatprep.subr.bf16.mxu0 %v3073_v1  ;;  %1198 = vmatprep.subr.bf16.mxu1 %v3076_v2  ;;  %v3157_v1 = vld [vmem:[#allocation10 + $0x24] ss:$16 sps:$4 sm:$0xff]   ;;  %v3155_v2 = vld [vmem:[#allocation10 + $0x20] ss:$16 sps:$4 sm:$0xff]  }
 0x134   :  { %1156 = vmatpush1.bf16.msra.mxu0 %v3071_v3  ;;  %1199 = vmatpush1.bf16.msra.mxu1 %v3074_v4  ;;  %v3197_v3 = vld [vmem:[#allocation10 + $0x2a0] ss:$16 sps:$4 sm:$0xff]   ;;  %v3199_v4 = vld [vmem:[#allocation10 + $0x2a4] ss:$16 sps:$4 sm:$0xff]  }
 0x135   :  { %1157 = vmatprep.subr.bf16.mxu0 %v3079_v5  ;;  %1200 = vmatprep.subr.bf16.mxu1 %v3082_v6  ;;  %v3160_v5 = vld [vmem:[#allocation10 + $0x4] ss:$16 sps:$4 sm:$0xff]   ;;  %v3158_v6 = vld [vmem:[#allocation10] ss:$16 sps:$4 sm:$0xff]  }
 0x138   :  { %1158 = vmatpush1.bf16.msra.mxu0 %v3077_v7  ;;  %1201 = vmatpush1.bf16.msra.mxu1 %v3080_v8  ;;  %v3203_v7 = vld [vmem:[#allocation10 + $0x280] ss:$16 sps:$4 sm:$0xff]   ;;  %v3205_v8 = vld [vmem:[#allocation10 + $0x284] ss:$16 sps:$4 sm:$0xff]  }
 0x139   :  { %1159 = vmatprep.subr.bf16.mxu0 %v3085_v9  ;;  %1202 = vmatprep.subr.bf16.mxu1 %v3088_v14  ;;  %v3163_v9 = vld [vmem:[#allocation10 + $0x1e4] ss:$16 sps:$4 sm:$0xff]   ;;  %v3161_v14 = vld [vmem:[#allocation10 + $0x1e0] ss:$16 sps:$4 sm:$0xff]  }
 0x13c   :  { %1160 = vmatpush1.bf16.msra.mxu0 %v3083_v15  ;;  %1203 = vmatpush1.bf16.msra.mxu1 %v3086_v16  ;;  %v3209_v15 = vld [vmem:[#allocation10 + $0x260] ss:$16 sps:$4 sm:$0xff]   ;;  %v3211_v16 = vld [vmem:[#allocation10 + $0x264] ss:$16 sps:$4 sm:$0xff]  }
 0x13d   :  { %1161 = vmatprep.subr.bf16.mxu0 %v3091_v17  ;;  %1204 = vmatprep.subr.bf16.mxu1 %v3094_v18  ;;  %v3166_v17 = vld [vmem:[#allocation10 + $0x1c4] ss:$16 sps:$4 sm:$0xff]   ;;  %v3164_v18 = vld [vmem:[#allocation10 + $0x1c0] ss:$16 sps:$4 sm:$0xff]  }
 0x140   :  { %1162 = vmatpush2.bf16.msra.mxu0 %v3089_v19  ;;  %1205 = vmatpush2.bf16.msra.mxu1 %v3092_v20  ;;  %v3215_v19 = vld [vmem:[#allocation10 + $0x240] ss:$16 sps:$4 sm:$0xff]   ;;  %v3217_v20 = vld [vmem:[#allocation10 + $0x244] ss:$16 sps:$4 sm:$0xff]  }
 0x141   :  { %1163 = vmatprep.subr.bf16.mxu0 %v3097_v21  ;;  %1206 = vmatprep.subr.bf16.mxu1 %v3100_v22  ;;  %v3169_v21 = vld [vmem:[#allocation10 + $0x1a4] ss:$16 sps:$4 sm:$0xff]   ;;  %v3167_v22 = vld [vmem:[#allocation10 + $0x1a0] ss:$16 sps:$4 sm:$0xff]  }
 0x144   :  { %1164 = vmatpush2.bf16.msra.mxu0 %v3095_v23  ;;  %1207 = vmatpush2.bf16.msra.mxu1 %v3098_v24  ;;  %v3221_v23 = vld [vmem:[#allocation10 + $0x220] ss:$16 sps:$4 sm:$0xff]   ;;  %v3223_v24 = vld [vmem:[#allocation10 + $0x224] ss:$16 sps:$4 sm:$0xff]  }
 0x145   :  { %1165 = vmatprep.subr.bf16.mxu0 %v3103_v25  ;;  %1208 = vmatprep.subr.bf16.mxu1 %v3106_v26  ;;  %v3172_v25 = vld [vmem:[#allocation10 + $0x184] ss:$16 sps:$4 sm:$0xff]   ;;  %v3170_v26 = vld [vmem:[#allocation10 + $0x180] ss:$16 sps:$4 sm:$0xff]  }
 0x148   :  { %1166 = vmatpush2.bf16.msra.mxu0 %v3101_v27  ;;  %1209 = vmatpush2.bf16.msra.mxu1 %v3104_v28  ;;  %v3227_v27 = vld [vmem:[#allocation10 + $0x200] ss:$16 sps:$4 sm:$0xff]   ;;  %v3229_v28 = vld [vmem:[#allocation10 + $0x204] ss:$16 sps:$4 sm:$0xff]  }
 0x149   :  { %1167 = vmatprep.subr.bf16.mxu0 %v3109_v29  ;;  %1210 = vmatprep.subr.bf16.mxu1 %v3112_v30  ;;  %v3175_v29 = vld [vmem:[#allocation10 + $0x164] ss:$16 sps:$4 sm:$0xff]   ;;  %v3173_v30 = vld [vmem:[#allocation10 + $0x160] ss:$16 sps:$4 sm:$0xff]  }
 0x14c   :  { %1168 = vmatpush2.bf16.msra.mxu0 %v3107_v31  ;;  %1211 = vmatpush2.bf16.msra.mxu1 %v3110_v32  ;;  %v3233_v31 = vld [vmem:[#allocation10 + $0x3e0] ss:$16 sps:$4 sm:$0xff]   ;;  %v3235_v32 = vld [vmem:[#allocation10 + $0x3e4] ss:$16 sps:$4 sm:$0xff]  }
 0x14d   :  { %1169 = vmatprep.subr.bf16.mxu0 %v3115_v33  ;;  %1212 = vmatprep.subr.bf16.mxu1 %v3118_v34  ;;  %v3178_v33 = vld [vmem:[#allocation10 + $0x144] ss:$16 sps:$4 sm:$0xff]   ;;  %v3176_v34 = vld [vmem:[#allocation10 + $0x140] ss:$16 sps:$4 sm:$0xff]  }
 0x150   :  { %1170 = vmatpush2.bf16.msra.mxu0 %v3113_v35  ;;  %1213 = vmatpush2.bf16.msra.mxu1 %v3116_v36  ;;  %v3239_v35 = vld [vmem:[#allocation10 + $0x3c0] ss:$16 sps:$4 sm:$0xff]   ;;  %v3241_v36 = vld [vmem:[#allocation10 + $0x3c4] ss:$16 sps:$4 sm:$0xff]  }
 0x151   :  { %1171 = vmatprep.subr.bf16.mxu0 %v3121_v37  ;;  %1214 = vmatprep.subr.bf16.mxu1 %v3124_v38  ;;  %v3181_v37 = vld [vmem:[#allocation10 + $0x124] ss:$16 sps:$4 sm:$0xff]   ;;  %v3179_v38 = vld [vmem:[#allocation10 + $0x120] ss:$16 sps:$4 sm:$0xff]  }
 0x154   :  { %1172 = vmatpush2.bf16.msra.mxu0 %v3119_v39  ;;  %1215 = vmatpush2.bf16.msra.mxu1 %v3122_v40  ;;  %v3245_v39 = vld [vmem:[#allocation10 + $0x3a0] ss:$16 sps:$4 sm:$0xff]   ;;  %v3247_v40 = vld [vmem:[#allocation10 + $0x3a4] ss:$16 sps:$4 sm:$0xff]  }
 0x155   :  { %1173 = vmatprep.subr.bf16.mxu0 %v3127_v41  ;;  %1216 = vmatprep.subr.bf16.mxu1 %v3130_v42  ;;  %v3184_v41 = vld [vmem:[#allocation10 + $0x104] ss:$16 sps:$4 sm:$0xff]   ;;  %v3182_v42 = vld [vmem:[#allocation10 + $0x100] ss:$16 sps:$4 sm:$0xff]  }
 0x158   :  { %1174 = vmatpush2.bf16.msra.mxu0 %v3125_v43  ;;  %1217 = vmatpush2.bf16.msra.mxu1 %v3128_v44  ;;  %v3251_v43 = vld [vmem:[#allocation10 + $0x380] ss:$16 sps:$4 sm:$0xff]   ;;  %v3253_v44 = vld [vmem:[#allocation10 + $0x384] ss:$16 sps:$4 sm:$0xff]  }
 0x159   :  { %1175 = vmatprep.subr.bf16.mxu0 %v3133_v45  ;;  %1218 = vmatprep.subr.bf16.mxu1 %v3136_v46  ;;  %v3190_v45 = vld [vmem:[#allocation10 + $0xec] ss:$16 sps:$4 sm:$0xff]   ;;  %v3257_v46 = vld [vmem:[#allocation10 + $0x360] ss:$16 sps:$4 sm:$0xff]  }
 0x15c   :  { %1176 = vmatpush2.bf16.msra.mxu0 %v3131_v49  ;;  %1219 = vmatpush2.bf16.msra.mxu1 %v3134_v50  ;;  %v3259_v49 = vld [vmem:[#allocation10 + $0x364] ss:$16 sps:$4 sm:$0xff]  }
 0x15d   :  { %2033 = vmatprep.subr.bf16.mxu0 %v3139_v51  ;;  %2076 = vmatprep.subr.bf16.mxu1 %v3187_v62  ;;  %v3265_v50 = vld [vmem:[#allocation10 + $0x344] ss:$16 sps:$4 sm:$0xff]   ;;  %v3263_v51 = vld [vmem:[#allocation10 + $0x340] ss:$16 sps:$4 sm:$0xff]  }
 0x15f   :  { %1178 = vmatmul.mubr.bf16.vlgmr.msra.gmra.mxu0 %v3620_v47  ;;  %1221 = vmatmul.mubr.bf16.vlgmr.msra.gmra.mxu1 %v3622_v48  ;;  %v3154_v47 = vld [vmem:[#allocation10 + $0x44] ss:$16 sps:$4 sm:$0xff]   ;;  %v3152_v48 = vld [vmem:[#allocation10 + $0x40] ss:$16 sps:$4 sm:$0xff]  }
 0x160   :  { %2034 = vmatpush1.bf16.msra.mxu0 %v3137_v52  ;;  %2077 = vmatpush1.bf16.msra.mxu1 %v3185_v61  ;;  %v3271_v52 = vld [vmem:[#allocation10 + $0x324] ss:$16 sps:$4 sm:$0xff]  }
 0x161   :  { %2035 = vmatprep.subr.bf16.mxu0 %v3142_v53  ;;  %2078 = vmatprep.subr.bf16.mxu1 %v3193_v0  ;;  %v3269_v53 = vld [vmem:[#allocation10 + $0x320] ss:$16 sps:$4 sm:$0xff]  }
 0x164   :  { %2036 = vmatpush1.bf16.msra.mxu0 %v3140_v54  ;;  %2079 = vmatpush1.bf16.msra.mxu1 %v3191_v63  ;;  %v3277_v54 = vld [vmem:[#allocation10 + $0x304] ss:$16 sps:$4 sm:$0xff]  }
 0x165   :  { %2037 = vmatprep.subr.bf16.mxu0 %v3145_v55  ;;  %2080 = vmatprep.subr.bf16.mxu1 %v3199_v4  ;;  %v3275_v55 = vld [vmem:[#allocation10 + $0x300] ss:$16 sps:$4 sm:$0xff]  }
 0x168   :  { %2038 = vmatpush1.bf16.msra.mxu0 %v3143_v56  ;;  %2081 = vmatpush1.bf16.msra.mxu1 %v3197_v3  ;;  %v3283_v56 = vld [vmem:[#allocation10 + $0x2ec] ss:$16 sps:$4 sm:$0xff]  }
 0x169   :  { %2039 = vmatprep.subr.bf16.mxu0 %v3148_v57  ;;  %2082 = vmatprep.subr.bf16.mxu1 %v3205_v8  ;;  %v3631_v57 = vld [vmem:[%s3666_s4] sm:$0xf] }
 0x16c   :  { %2040 = vmatpush1.bf16.msra.mxu0 %v3146_v58  ;;  %2083 = vmatpush1.bf16.msra.mxu1 %v3203_v7  ;;  %v406_v58 = vrot.slane %v3631_v57, %v3608_v10 }
 0x16d   :  { %2041 = vmatprep.subr.bf16.mxu0 %v3151_v59  ;;  %2084 = vmatprep.subr.bf16.mxu1 %v3211_v16  ;;  %v402_v59 = vrot.slane %v3631_v57, %v3612_v12 }
 0x170   :  { %2042 = vmatpush1.bf16.msra.mxu0 %v3149_v60  ;;  %2085 = vmatpush1.bf16.msra.mxu1 %v3209_v15 }
 0x171   :  { %2043 = vmatprep.subr.bf16.mxu0 %v3154_v47  ;;  %2086 = vmatprep.subr.bf16.mxu1 %v3217_v20 }
 0x174   :  { %2044 = vmatpush1.bf16.msra.mxu0 %v3152_v48  ;;  %2087 = vmatpush1.bf16.msra.mxu1 %v3215_v19  ;;  %v3188_v19 = vld [vmem:[#allocation10 + $0xe8] ss:$16 sps:$4 sm:$0xff]  }
 0x175   :  { %2045 = vmatprep.subr.bf16.mxu0 %v3157_v1  ;;  %2088 = vmatprep.subr.bf16.mxu1 %v3223_v24  ;;  %v3200_v24 = vld [vmem:[#allocation10 + $0xa8] ss:$16 sps:$4 sm:$0xff]  }
 0x178   :  { %2046 = vmatpush1.bf16.msra.mxu0 %v3155_v2  ;;  %2089 = vmatpush1.bf16.msra.mxu1 %v3221_v23  ;;  %v3202_v23 = vld [vmem:[#allocation10 + $0xac] ss:$16 sps:$4 sm:$0xff]  }
 0x179   :  { %2047 = vmatprep.subr.bf16.mxu0 %v3160_v5  ;;  %2090 = vmatprep.subr.bf16.mxu1 %v3229_v28  ;;  %v3212_v28 = vld [vmem:[#allocation10 + $0x68] ss:$16 sps:$4 sm:$0xff]  }
 0x17c   :  { %2048 = vmatpush1.bf16.msra.mxu0 %v3158_v6  ;;  %2091 = vmatpush1.bf16.msra.mxu1 %v3227_v27  ;;  %v3214_v27 = vld [vmem:[#allocation10 + $0x6c] ss:$16 sps:$4 sm:$0xff]  }
 0x17d   :  { %2049 = vmatprep.subr.bf16.mxu0 %v3163_v9  ;;  %2092 = vmatprep.subr.bf16.mxu1 %v3235_v32  ;;  %v3224_v32 = vld [vmem:[#allocation10 + $0x28] ss:$16 sps:$4 sm:$0xff]  }
 0x180   :  { %2050 = vmatpush2.bf16.msra.mxu0 %v3161_v14  ;;  %2093 = vmatpush2.bf16.msra.mxu1 %v3233_v31  ;;  %v3226_v31 = vld [vmem:[#allocation10 + $0x2c] ss:$16 sps:$4 sm:$0xff]  }
 0x181   :  { %2051 = vmatprep.subr.bf16.mxu0 %v3166_v17  ;;  %2094 = vmatprep.subr.bf16.mxu1 %v3241_v36  ;;  %v3236_v36 = vld [vmem:[#allocation10 + $0x1e8] ss:$16 sps:$4 sm:$0xff]  }
 0x184   :  { %2052 = vmatpush2.bf16.msra.mxu0 %v3164_v18  ;;  %2095 = vmatpush2.bf16.msra.mxu1 %v3239_v35  ;;  %v3238_v35 = vld [vmem:[#allocation10 + $0x1ec] ss:$16 sps:$4 sm:$0xff]  }
 0x185   :  { %2053 = vmatprep.subr.bf16.mxu0 %v3169_v21  ;;  %2096 = vmatprep.subr.bf16.mxu1 %v3247_v40  ;;  %v3196_v21 = vld [vmem:[#allocation10 + $0xcc] ss:$16 sps:$4 sm:$0xff]   ;;  %v3248_v40 = vld [vmem:[#allocation10 + $0x1a8] ss:$16 sps:$4 sm:$0xff]  }
 0x188   :  { %2054 = vmatpush2.bf16.msra.mxu0 %v3167_v22  ;;  %2097 = vmatpush2.bf16.msra.mxu1 %v3245_v39  ;;  %v3194_v22 = vld [vmem:[#allocation10 + $0xc8] ss:$16 sps:$4 sm:$0xff]   ;;  %v3250_v39 = vld [vmem:[#allocation10 + $0x1ac] ss:$16 sps:$4 sm:$0xff]  }
 0x189   :  { %2055 = vmatprep.subr.bf16.mxu0 %v3172_v25  ;;  %2098 = vmatprep.subr.bf16.mxu1 %v3253_v44  ;;  %v3208_v25 = vld [vmem:[#allocation10 + $0x8c] ss:$16 sps:$4 sm:$0xff]   ;;  %v3260_v44 = vld [vmem:[#allocation10 + $0x168] ss:$16 sps:$4 sm:$0xff]  }
 0x18c   :  { %2056 = vmatpush2.bf16.msra.mxu0 %v3170_v26  ;;  %2099 = vmatpush2.bf16.msra.mxu1 %v3251_v43  ;;  %v3206_v26 = vld [vmem:[#allocation10 + $0x88] ss:$16 sps:$4 sm:$0xff]   ;;  %v3262_v43 = vld [vmem:[#allocation10 + $0x16c] ss:$16 sps:$4 sm:$0xff]  }
 0x18d   :  { %2057 = vmatprep.subr.bf16.mxu0 %v3175_v29  ;;  %2100 = vmatprep.subr.bf16.mxu1 %v3259_v49  ;;  %v3220_v29 = vld [vmem:[#allocation10 + $0x4c] ss:$16 sps:$4 sm:$0xff]   ;;  %v410_v49 = vrot.slane %v3631_v57, %v3614_v13 }
 0x190   :  { %2058 = vmatpush2.bf16.msra.mxu0 %v3173_v30  ;;  %2101 = vmatpush2.bf16.msra.mxu1 %v3257_v46  ;;  %v3218_v30 = vld [vmem:[#allocation10 + $0x48] ss:$16 sps:$4 sm:$0xff]   ;;  %v414_v46 = vrot.slane %v3631_v57, %v3610_v11 }
 0x191   :  { %2059 = vmatprep.subr.bf16.mxu0 %v3178_v33  ;;  %2102 = vmatprep.subr.bf16.mxu1 %v3265_v50  ;;  %v3232_v33 = vld [vmem:[#allocation10 + $0xc] ss:$16 sps:$4 sm:$0xff]  }
 0x194   :  { %2060 = vmatpush2.bf16.msra.mxu0 %v3176_v34  ;;  %2103 = vmatpush2.bf16.msra.mxu1 %v3263_v51  ;;  %v3230_v34 = vld [vmem:[#allocation10 + $0x8] ss:$16 sps:$4 sm:$0xff]  }
 0x195   :  { %2061 = vmatprep.subr.bf16.mxu0 %v3181_v37  ;;  %2104 = vmatprep.subr.bf16.mxu1 %v3271_v52  ;;  %v3244_v37 = vld [vmem:[#allocation10 + $0x1cc] ss:$16 sps:$4 sm:$0xff]   ;;  %v3266_v52 = vld [vmem:[#allocation10 + $0x148] ss:$16 sps:$4 sm:$0xff]  }
 0x198   :  { %2062 = vmatpush2.bf16.msra.mxu0 %v3179_v38  ;;  %2105 = vmatpush2.bf16.msra.mxu1 %v3269_v53  ;;  %v3242_v38 = vld [vmem:[#allocation10 + $0x1c8] ss:$16 sps:$4 sm:$0xff]  }
 0x199   :  { %2063 = vmatprep.subr.bf16.mxu0 %v3184_v41  ;;  %2106 = vmatprep.subr.bf16.mxu1 %v3277_v54  ;;  %v3256_v41 = vld [vmem:[#allocation10 + $0x18c] ss:$16 sps:$4 sm:$0xff]  }
 0x19c   :  { %2064 = vmatpush2.bf16.msra.mxu0 %v3182_v42  ;;  %2107 = vmatpush2.bf16.msra.mxu1 %v3275_v55  ;;  %v3254_v42 = vld [vmem:[#allocation10 + $0x188] ss:$16 sps:$4 sm:$0xff]   ;;  %v3274_v55 = vld [vmem:[#allocation10 + $0x12c] ss:$16 sps:$4 sm:$0xff]  }
 0x19d   :  { %2119 = vmatprep.subr.bf16.mxu0 %v3190_v45  ;;  %2162 = vmatprep.subr.bf16.mxu1 %v3283_v56  ;;  %v3268_v45 = vld [vmem:[#allocation10 + $0x14c] ss:$16 sps:$4 sm:$0xff]  }
 0x1df   :  { %v1093_v60 = vpop.f32.mrf.mxu0  ;;  %v1136_v61 = vpop.f32.mrf.mxu1 }
 0x1e0   :  { %v1094_v63 = vadd.f32 %v1093_v60, %v402_v59 }
 0x1e1   :  { %v1095_v62 = vpop.f32.mrf.mxu0  ;;  %v1138_v47 = vpop.f32.mrf.mxu1 }
 0x1e2   :  { %v1096_v48 = vadd.f32 %v1095_v62, %v406_v58  ;;  %v1137_v7 = vadd.f32 %v1136_v61, %v1094_v63  ;;  %v3272_v62 = vld [vmem:[#allocation10 + $0x128] ss:$16 sps:$4 sm:$0xff]  }
 0x1e3   :  { %v1097_v0 = vpop.f32.mrf.mxu0  ;;  %v1140_v1 = vpop.f32.mrf.mxu1 }
 0x1e4   :  { %v1098_v2 = vadd.f32 %v1097_v0, %v402_v59  ;;  %v1139_v4 = vadd.f32 %v1138_v47, %v1096_v48  ;;  %v1231_v17 = vmax.f32 %v1137_v7, 0.0  ;;  %v3280_v48 = vld [vmem:[#allocation10 + $0x10c] ss:$16 sps:$4 sm:$0xff]  }
 0x1e5   :  { %v1099_v3 = vpop.f32.mrf.mxu0  ;;  %v1142_v8 = vpop.f32.mrf.mxu1 }
 0x1e6   :  { %v1141_v5 = vadd.f32 %v1140_v1, %v1098_v2  ;;  %v1100_v6 = vadd.f32 %v1099_v3, %v406_v58  ;;  %v1232_v15 = vmax.f32 %v1139_v4, 0.0  ;;  %v3278_v4 = vld [vmem:[#allocation10 + $0x108] ss:$16 sps:$4 sm:$0xff]  }
 0x1e8   :  { %v1143_v9 = vadd.f32 %v1142_v8, %v1100_v6  ;;  %v1235_v14 = vmax.f32 %v1141_v5, 0.0 }
 0x1ea   :  { %v1236_v16 = vmax.f32 %v1143_v9, 0.0  ;;  %v3637_v20 = vpack.c.bf16 %v1235_v14, %v1231_v17  ;;  %v3281_v14 = vld [vmem:[#allocation10 + $0x2e8] ss:$16 sps:$4 sm:$0xff]  }
 0x1eb   :  { %v3284_v17 = vld [vmem:[#allocation10 + $0x2c8] ss:$16 sps:$4 sm:$0xff]  }
 0x1ec   :  { %v1240_v18 = vpack.c.bf16 %v1236_v16, %v1232_v15  ;;  %v3286_v16 = vld [vmem:[#allocation10 + $0x2cc] ss:$16 sps:$4 sm:$0xff]  }
 0x1ee   :  { %2065 = vmatprep.mubr.bf16.mxu0 %v1240_v18 }
 0x1ef   :  { %2066 = vmatmul.mubr.bf16.vlgmr.msra.gmra.mxu0 %v3637_v20 }
 0x1f0   :  { %2120 = vmatpush1.bf16.msra.mxu0 %v3188_v19  ;;  %2151 = vmatprep.mubr.bf16.mxu0 %v1240_v18  ;;  %v3289_v18 = vld [vmem:[#allocation10 + $0x2ac] ss:$16 sps:$4 sm:$0xff]   ;;  %v3287_v19 = vld [vmem:[#allocation10 + $0x2a8] ss:$16 sps:$4 sm:$0xff]  }
 0x1f1   :  { %2121 = vmatprep.subr.bf16.mxu0 %v3196_v21  ;;  %v3292_v21 = vld [vmem:[#allocation10 + $0x28c] ss:$16 sps:$4 sm:$0xff]  }
 0x1f4   :  { %2122 = vmatpush1.bf16.msra.mxu0 %v3194_v22  ;;  %v3329_v22 = vld [vmem:[#allocation11 + $0x78] sm:$0xff]  }
 0x1f5   :  { %2123 = vmatprep.subr.bf16.mxu0 %v3202_v23  ;;  %v3330_v23 = vld [vmem:[#allocation11 + $0x38] sm:$0xff]  }
 0x1f8   :  { %2124 = vmatpush1.bf16.msra.mxu0 %v3200_v24  ;;  %v3331_v24 = vld [vmem:[#allocation11 + $0x70] sm:$0xff]  }
 0x1f9   :  { %2125 = vmatprep.subr.bf16.mxu0 %v3208_v25  ;;  %v3290_v25 = vld [vmem:[#allocation10 + $0x288] ss:$16 sps:$4 sm:$0xff]  }
 0x1fc   :  { %2126 = vmatpush1.bf16.msra.mxu0 %v3206_v26  ;;  %v3295_v26 = vld [vmem:[#allocation10 + $0x26c] ss:$16 sps:$4 sm:$0xff]  }
 0x1fd   :  { %2127 = vmatprep.subr.bf16.mxu0 %v3214_v27  ;;  %v3332_v27 = vld [vmem:[#allocation11 + $0x30] sm:$0xff]  }
 0x200   :  { %2128 = vmatpush1.bf16.msra.mxu0 %v3212_v28  ;;  %v3293_v28 = vld [vmem:[#allocation10 + $0x268] ss:$16 sps:$4 sm:$0xff]  }
 0x201   :  { %2129 = vmatprep.subr.bf16.mxu0 %v3220_v29  ;;  %v3298_v29 = vld [vmem:[#allocation10 + $0x24c] ss:$16 sps:$4 sm:$0xff]  }
 0x204   :  { %2130 = vmatpush1.bf16.msra.mxu0 %v3218_v30  ;;  %v3334_v30 = vld [vmem:[#allocation11 + $0x28] sm:$0xff]  }
 0x205   :  { %2131 = vmatprep.subr.bf16.mxu0 %v3226_v31  ;;  %v3335_v31 = vld [vmem:[#allocation11 + $0x60] sm:$0xff]  }
 0x208   :  { %2132 = vmatpush1.bf16.msra.mxu0 %v3224_v32  ;;  %v3296_v32 = vld [vmem:[#allocation10 + $0x248] ss:$16 sps:$4 sm:$0xff]  }
 0x209   :  { %2133 = vmatprep.subr.bf16.mxu0 %v3232_v33  ;;  %v3301_v33 = vld [vmem:[#allocation10 + $0x22c] ss:$16 sps:$4 sm:$0xff]  }
 0x20c   :  { %2134 = vmatpush1.bf16.msra.mxu0 %v3230_v34  ;;  %v3336_v34 = vld [vmem:[#allocation11 + $0x20] sm:$0xff]  }
 0x20d   :  { %2135 = vmatprep.subr.bf16.mxu0 %v3238_v35  ;;  %v3337_v35 = vld [vmem:[#allocation11 + $0x58] sm:$0xff]  }
 0x210   :  { %2136 = vmatpush2.bf16.msra.mxu0 %v3236_v36  ;;  %v3299_v36 = vld [vmem:[#allocation10 + $0x228] ss:$16 sps:$4 sm:$0xff]  }
 0x211   :  { %2137 = vmatprep.subr.bf16.mxu0 %v3244_v37  ;;  %v3304_v37 = vld [vmem:[#allocation10 + $0x20c] ss:$16 sps:$4 sm:$0xff]  }
 0x214   :  { %2138 = vmatpush2.bf16.msra.mxu0 %v3242_v38  ;;  %v3338_v38 = vld [vmem:[#allocation11 + $0x18] sm:$0xff]  }
 0x215   :  { %2139 = vmatprep.subr.bf16.mxu0 %v3250_v39  ;;  %v3302_v39 = vld [vmem:[#allocation10 + $0x208] ss:$16 sps:$4 sm:$0xff]  }
 0x218   :  { %2140 = vmatpush2.bf16.msra.mxu0 %v3248_v40  ;;  %v3307_v40 = vld [vmem:[#allocation10 + $0x3ec] ss:$16 sps:$4 sm:$0xff]  }
 0x219   :  { %2141 = vmatprep.subr.bf16.mxu0 %v3256_v41  ;;  %v3305_v41 = vld [vmem:[#allocation10 + $0x3e8] ss:$16 sps:$4 sm:$0xff]  }
 0x21c   :  { %2142 = vmatpush2.bf16.msra.mxu0 %v3254_v42  ;;  %v3310_v42 = vld [vmem:[#allocation10 + $0x3cc] ss:$16 sps:$4 sm:$0xff]  }
 0x21d   :  { %2143 = vmatprep.subr.bf16.mxu0 %v3262_v43  ;;  %v3308_v43 = vld [vmem:[#allocation10 + $0x3c8] ss:$16 sps:$4 sm:$0xff]  }
 0x21f   :  { %v1179_v50 = vpop.f32.mrf.mxu0  ;;  %v1222_v51 = vpop.f32.mrf.mxu1 }
 0x220   :  { %2144 = vmatpush2.bf16.msra.mxu0 %v3260_v44  ;;  %v1180_v58 = vadd.f32 %v1179_v50, %v410_v49  ;;  %v3313_v44 = vld [vmem:[#allocation10 + $0x3ac] ss:$16 sps:$4 sm:$0xff]  }
 0x221   :  { %v1181_v53 = vpop.f32.mrf.mxu0  ;;  %v1224_v54 = vpop.f32.mrf.mxu1  ;;  %2145 = vmatprep.subr.bf16.mxu0 %v3268_v45  ;;  %v3311_v45 = vld [vmem:[#allocation10 + $0x3a8] ss:$16 sps:$4 sm:$0xff]   ;;  %v3319_v50 = vld [vmem:[#allocation10 + $0x36c] ss:$16 sps:$4 sm:$0xff]  }
 0x222   :  { %v1182_v56 = vadd.f32 %v1181_v53, %v414_v46  ;;  %v1223_v1 = vadd.f32 %v1222_v51, %v1180_v58  ;;  %v3317_v51 = vld [vmem:[#allocation10 + $0x368] ss:$16 sps:$4 sm:$0xff]  }
 0x223   :  { %v1183_v59 = vpop.f32.mrf.mxu0  ;;  %v1226_v60 = vpop.f32.mrf.mxu1  ;;  %v3320_v53 = vld [vmem:[#allocation10 + $0x348] ss:$16 sps:$4 sm:$0xff]  }
 0x224   :  { %v1184_v61 = vadd.f32 %v1183_v59, %v410_v49  ;;  %2146 = vmatpush2.bf16.msra.mxu0 %v3266_v52  ;;  %v1225_v63 = vadd.f32 %v1224_v54, %v1182_v56  ;;  %v1233_v8 = vmax.f32 %v1223_v1, 0.0  ;;  %v3314_v49 = vld [vmem:[#allocation10 + $0x388] ss:$16 sps:$4 sm:$0xff]   ;;  %v3322_v52 = vld [vmem:[#allocation10 + $0x34c] ss:$16 sps:$4 sm:$0xff]   ;;  %v3339_v59 = vld [vmem:[#allocation11 + $0x50] sm:$0xff]  }
 0x225   :  { %v1185_v47 = vpop.f32.mrf.mxu0  ;;  %2147 = vmatprep.subr.bf16.mxu0 %v3274_v55  ;;  %v1228_v2 = vpop.f32.mrf.mxu1  ;;  %v3325_v54 = vld [vmem:[#allocation10 + $0x32c] ss:$16 sps:$4 sm:$0xff]   ;;  %v3323_v55 = vld [vmem:[#allocation10 + $0x328] ss:$16 sps:$4 sm:$0xff]   ;;  %v3348_v1 = vld [vmem:[#allocation11 + $0xb0] sm:$0xff]  }
 0x226   :  { %v1227_v57 = vadd.f32 %v1226_v60, %v1184_v61  ;;  %v1186_v0 = vadd.f32 %v1185_v47, %v414_v46  ;;  %v1234_v6 = vmax.f32 %v1225_v63, 0.0  ;;  %v3316_v46 = vld [vmem:[#allocation10 + $0x38c] ss:$16 sps:$4 sm:$0xff]   ;;  %v3326_v58 = vld [vmem:[#allocation10 + $0x308] ss:$16 sps:$4 sm:$0xff]   ;;  %v3340_v60 = vld [vmem:[#allocation11 + $0x10] sm:$0xff]  }
 0x227   :  { %v3328_v56 = vld [vmem:[#allocation10 + $0x30c] ss:$16 sps:$4 sm:$0xff]   ;;  %v3343_v47 = vld [vmem:[#allocation11 + $0x40] sm:$0xff]  }
 0x228   :  { %v1229_v3 = vadd.f32 %v1228_v2, %v1186_v0  ;;  %2148 = vmatpush2.bf16.msra.mxu0 %v3272_v62  ;;  %v1237_v5 = vmax.f32 %v1227_v57, 0.0  ;;  %v3341_v61 = vld [vmem:[#allocation11 + $0x48] sm:$0xff]   ;;  %v3345_v63 = vld [vmem:[#allocation11 + $0xf8] sm:$0xff]   ;;  %v3347_v0 = vld [vmem:[#allocation11 + $0xf0] sm:$0xff]  }
 0x229   :  { %2149 = vmatprep.subr.bf16.mxu0 %v3280_v48  ;;  %v3342_v62 = vld [vmem:[#allocation11 + $0x8] sm:$0xff]   ;;  %v3344_v48 = vld [vmem:[#allocation11] sm:$0xff]   ;;  %v3346_v57 = vld [vmem:[#allocation11 + $0xb8] sm:$0xff]  }
 0x22a   :  { %v1238_v7 = vmax.f32 %v1229_v3, 0.0  ;;  %v3644_v15 = vpack.c.bf16 %v1237_v5, %v1233_v8  ;;  %v3349_v2 = vld [vmem:[#allocation11 + $0xe8] sm:$0xff]   ;;  %v3352_v5 = vld [vmem:[#allocation11 + $0xa0] sm:$0xff]   ;;  %v3355_v8 = vld [vmem:[#allocation11 + $0xd0] sm:$0xff]  }
 0x22b   :  { %v3350_v3 = vld [vmem:[#allocation11 + $0xa8] sm:$0xff]  }
 0x22c   :  { %v1242_v9 = vpack.c.bf16 %v1238_v7, %v1234_v6  ;;  %2150 = vmatpush2.bf16.msra.mxu0 %v3278_v4  ;;  %v3351_v4 = vld [vmem:[#allocation11 + $0xe0] sm:$0xff]   ;;  %v3353_v6 = vld [vmem:[#allocation11 + $0xd8] sm:$0xff]  }
 0x22d   :  { %2880 = vmatprep.subr.bf16.mxu0 %v3329_v22  ;;  %v3354_v7 = vld [vmem:[#allocation11 + $0x98] sm:$0xff]  }
 0x22e   :  { %2108 = vmatprep.mubr.bf16.mxu1 %v1242_v9 }
 0x22f   :  { %2109 = vmatmul.mubr.bf16.vlgmr.msra.gmra.mxu1 %v3644_v15  ;;  %2152 = vmatmul.mubr.bf16.vlgmr.msra.gmra.mxu0 %v3637_v20  ;;  %v3333_v20 = vld [vmem:[#allocation11 + $0x68] sm:$0xff]  }
 0x230   :  { %2163 = vmatpush1.bf16.msra.mxu1 %v3281_v14  ;;  %2194 = vmatprep.mubr.bf16.mxu1 %v1242_v9  ;;  %v3356_v9 = vld [vmem:[#allocation11 + $0x90] sm:$0xff]   ;;  %v3357_v14 = vld [vmem:[#allocation11 + $0xc8] sm:$0xff]  }
 0x231   :  { %2164 = vmatprep.subr.bf16.mxu1 %v3286_v16  ;;  %2881 = vmatpush3.bf16.msra.mxu0 %v3330_v23  ;;  %v3359_v16 = vld [vmem:[#allocation11 + $0xc0] sm:$0xff]  }
 0x232   :  { %2882 = vmatprep.subr.bf16.mxu0 %v3331_v24 }
 0x234   :  { %2165 = vmatpush1.bf16.msra.mxu1 %v3284_v17  ;;  %v3360_v17 = vld [vmem:[#allocation11 + $0x80] sm:$0xff]  }
 0x235   :  { %2166 = vmatprep.subr.bf16.mxu1 %v3289_v18  ;;  %2883 = vmatpush3.bf16.msra.mxu0 %v3332_v27 }
 0x236   :  { %2884 = vmatprep.subr.bf16.mxu0 %v3333_v20 }
 0x238   :  { %2167 = vmatpush1.bf16.msra.mxu1 %v3287_v19 }
 0x239   :  { %2168 = vmatprep.subr.bf16.mxu1 %v3292_v21  ;;  %2885 = vmatpush3.bf16.msra.mxu0 %v3334_v30  ;;  %v1371_v21 = vld [vmem:[%s3668_s6] sm:$0xf] }
 0x23a   :  { %2886 = vmatprep.subr.bf16.mxu0 %v3335_v31  ;;  %v1380_v23 = vrot.slane %v1371_v21, %v3608_v10  ;;  %v1376_v24 = vrot.slane %v1371_v21, %v3612_v12 }
 0x23c   :  { %2169 = vmatpush1.bf16.msra.mxu1 %v3290_v25 }
 0x23d   :  { %2170 = vmatprep.subr.bf16.mxu1 %v3295_v26  ;;  %2887 = vmatpush3.bf16.msra.mxu0 %v3336_v34 }
 0x23e   :  { %2888 = vmatprep.subr.bf16.mxu0 %v3337_v35 }
 0x240   :  { %2171 = vmatpush1.bf16.msra.mxu1 %v3293_v28 }
 0x241   :  { %2172 = vmatprep.subr.bf16.mxu1 %v3298_v29  ;;  %2889 = vmatpush3.bf16.msra.mxu0 %v3338_v38 }
 0x242   :  { %2890 = vmatprep.subr.bf16.mxu0 %v3339_v59 }
 0x244   :  { %2173 = vmatpush1.bf16.msra.mxu1 %v3296_v32 }
 0x245   :  { %2174 = vmatprep.subr.bf16.mxu1 %v3301_v33  ;;  %2891 = vmatpush3.bf16.msra.mxu0 %v3340_v60 }
 0x246   :  { %2892 = vmatprep.subr.bf16.mxu0 %v3341_v61 }
 0x248   :  { %2175 = vmatpush1.bf16.msra.mxu1 %v3299_v36 }
 0x249   :  { %2176 = vmatprep.subr.bf16.mxu1 %v3304_v37  ;;  %2893 = vmatpush3.bf16.msra.mxu0 %v3342_v62 }
 0x24a   :  { %2894 = vmatprep.subr.bf16.mxu0 %v3343_v47 }
 0x24c   :  { %2177 = vmatpush1.bf16.msra.mxu1 %v3302_v39 }
 0x24d   :  { %2178 = vmatprep.subr.bf16.mxu1 %v3307_v40  ;;  %2895 = vmatpush3.bf16.msra.mxu0 %v3344_v48 }
 0x250   :  { %2179 = vmatpush2.bf16.msra.mxu1 %v3305_v41 }
 0x251   :  { %2180 = vmatprep.subr.bf16.mxu1 %v3310_v42 }
 0x254   :  { %2181 = vmatpush2.bf16.msra.mxu1 %v3308_v43 }
 0x255   :  { %2182 = vmatprep.subr.bf16.mxu1 %v3313_v44  ;;  %v1388_v44 = vrot.slane %v1371_v21, %v3610_v11 }
 0x258   :  { %2183 = vmatpush2.bf16.msra.mxu1 %v3311_v45  ;;  %v1384_v45 = vrot.slane %v1371_v21, %v3614_v13 }
 0x259   :  { %2184 = vmatprep.subr.bf16.mxu1 %v3316_v46 }
 0x25c   :  { %2185 = vmatpush2.bf16.msra.mxu1 %v3314_v49 }
 0x25d   :  { %2186 = vmatprep.subr.bf16.mxu1 %v3319_v50 }
 0x260   :  { %2187 = vmatpush2.bf16.msra.mxu1 %v3317_v51 }
 0x261   :  { %2188 = vmatprep.subr.bf16.mxu1 %v3322_v52 }
 0x264   :  { %2189 = vmatpush2.bf16.msra.mxu1 %v3320_v53 }
 0x265   :  { %2190 = vmatprep.subr.bf16.mxu1 %v3325_v54 }
 0x268   :  { %2191 = vmatpush2.bf16.msra.mxu1 %v3323_v55 }
 0x269   :  { %2192 = vmatprep.subr.bf16.mxu1 %v3328_v56 }
 0x26c   :  { %2193 = vmatpush2.bf16.msra.mxu1 %v3326_v58 }
 0x26d   :  { %2902 = vmatprep.subr.bf16.mxu1 %v3345_v63 }
 0x26f   :  { %2195 = vmatmul.mubr.bf16.vlgmr.msra.gmra.mxu1 %v3644_v15  ;;  %v3358_v15 = vld [vmem:[#allocation11 + $0x88] sm:$0xff]  }
 0x270   :  { %2903 = vmatpush3.bf16.msra.mxu1 %v3346_v57 }
 0x271   :  { %2904 = vmatprep.subr.bf16.mxu1 %v3347_v0 }
 0x274   :  { %2905 = vmatpush3.bf16.msra.mxu1 %v3348_v1 }
 0x275   :  { %2906 = vmatprep.subr.bf16.mxu1 %v3349_v2 }
 0x278   :  { %2907 = vmatpush3.bf16.msra.mxu1 %v3350_v3  ;;  %v2847_v3 = vld [vmem:[%s3670_s8] ss:$0 sm:$0xff] }
 0x279   :  { %2908 = vmatprep.subr.bf16.mxu1 %v3351_v4 }
 0x27c   :  { %2909 = vmatpush3.bf16.msra.mxu1 %v3352_v5 }
 0x27d   :  { %2910 = vmatprep.subr.bf16.mxu1 %v3353_v6 }
 0x280   :  { %2911 = vmatpush3.bf16.msra.mxu1 %v3354_v7 }
 0x281   :  { %2912 = vmatprep.subr.bf16.mxu1 %v3355_v8 }
 0x284   :  { %2913 = vmatpush3.bf16.msra.mxu1 %v3356_v9 }
 0x285   :  { %2914 = vmatprep.subr.bf16.mxu1 %v3357_v14 }
 0x288   :  { %2915 = vmatpush3.bf16.msra.mxu1 %v3358_v15 }
 0x289   :  { %2916 = vmatprep.subr.bf16.mxu1 %v3359_v16 }
 0x28c   :  { %2917 = vmatpush3.bf16.msra.mxu1 %v3360_v17 }
 0x2af   :  { %v2067_v18 = vpop.f32.mrf.mxu0 }
 0x2b0   :  { %v2068_v29 = vadd.f32 %v2067_v18, %v1376_v24 }
 0x2b1   :  { %v2069_v19 = vpop.f32.mrf.mxu0 }
 0x2b2   :  { %v2070_v20 = vadd.f32 %v2069_v19, %v1380_v23 }
 0x2b3   :  { %v2071_v22 = vpop.f32.mrf.mxu0 }
 0x2b4   :  { %v2072_v28 = vadd.f32 %v2071_v22, %v1376_v24 }
 0x2b5   :  { %v2073_v26 = vpop.f32.mrf.mxu0 }
 0x2b6   :  { %v2074_v31 = vadd.f32 %v2073_v26, %v1380_v23 }
 0x2ef   :  { %v2110_v25 = vpop.f32.mrf.mxu1  ;;  %v2153_v12 = vpop.f32.mrf.mxu0 }
 0x2f0   :  { %v2111_v34 = vadd.f32 %v2110_v25, %v2068_v29  ;;  %v2154_v53 = vadd.f32 %v2153_v12, %v1384_v45 }
 0x2f1   :  { %v2112_v27 = vpop.f32.mrf.mxu1  ;;  %v2155_v42 = vpop.f32.mrf.mxu0 }
 0x2f2   :  { %v2113_v32 = vadd.f32 %v2112_v27, %v2070_v20  ;;  %v2205_v40 = vmax.f32 %v2111_v34, 0.0  ;;  %v2156_v51 = vadd.f32 %v2155_v42, %v1388_v44 }
 0x2f3   :  { %v2114_v30 = vpop.f32.mrf.mxu1  ;;  %v2157_v43 = vpop.f32.mrf.mxu0 }
 0x2f4   :  { %v2115_v33 = vadd.f32 %v2114_v30, %v2072_v28  ;;  %v2206_v38 = vmax.f32 %v2113_v32, 0.0  ;;  %v2158_v52 = vadd.f32 %v2157_v43, %v1384_v45 }
 0x2f5   :  { %v2116_v35 = vpop.f32.mrf.mxu1  ;;  %v2159_v49 = vpop.f32.mrf.mxu0 }
 0x2f6   :  { %v2117_v36 = vadd.f32 %v2116_v35, %v2074_v31  ;;  %v2209_v37 = vmax.f32 %v2115_v33, 0.0  ;;  %v2160_v55 = vadd.f32 %v2159_v49, %v1388_v44 }
 0x2f8   :  { %v2210_v39 = vmax.f32 %v2117_v36, 0.0  ;;  %v2213_v41 = vpack.c.bf16 %v2209_v37, %v2205_v40 }
 0x2fa   :  { %v2214_v10 = vpack.c.bf16 %v2210_v39, %v2206_v38 }
 0x2fc   :  { %2512 = vmatprep.mubr.bf16.mxu0 %v2214_v10 }
 0x2fd   :  { %2513 = vmatmul.mubr.bf16.vlgmr.msra.gmra.mxu0 %v2213_v41 }
 0x32f   :  { %v2196_v46 = vpop.f32.mrf.mxu1 }
 0x330   :  { %v2197_v59 = vadd.f32 %v2196_v46, %v2154_v53 }
 0x331   :  { %v2198_v50 = vpop.f32.mrf.mxu1 }
 0x332   :  { %v2199_v56 = vadd.f32 %v2198_v50, %v2156_v51  ;;  %v2207_v63 = vmax.f32 %v2197_v59, 0.0 }
 0x333   :  { %v2200_v54 = vpop.f32.mrf.mxu1 }
 0x334   :  { %v2201_v58 = vadd.f32 %v2200_v54, %v2158_v52  ;;  %v2208_v47 = vmax.f32 %v2199_v56, 0.0 }
 0x335   :  { %v2202_v60 = vpop.f32.mrf.mxu1 }
 0x336   :  { %v2203_v61 = vadd.f32 %v2202_v60, %v2160_v55  ;;  %v2211_v62 = vmax.f32 %v2201_v58, 0.0 }
 0x338   :  { %v2212_v48 = vmax.f32 %v2203_v61, 0.0  ;;  %v2215_v57 = vpack.c.bf16 %v2211_v62, %v2207_v63 }
 0x33a   :  { %v2216_v11 = vpack.c.bf16 %v2212_v48, %v2208_v47 }
 0x33c   :  { %2553 = vmatprep.mubr.bf16.mxu1 %v2216_v11 }
 0x33d   :  { %2554 = vmatmul.mubr.bf16.vlgmr.msra.gmra.mxu1 %v2215_v57 }
 0x3bd   :  { %v2896_v13 = vpop.f32.mrf.mxu0 }
 0x3bf   :  { %v2897_v0 = vpop.f32.mrf.mxu0 }
 0x3c0   :  { %v2898_v2 = vadd.f32 %v2897_v0, %v2896_v13 }
 0x3c1   :  { %v2899_v1 = vpop.f32.mrf.mxu0 }
 0x3c2   :  { %v2515_v7 = vadd.f32 %v2898_v2, %v2847_v3 }
 0x3c3   :  { %v2900_v4 = vpop.f32.mrf.mxu0 }
 0x3c4   :  { %v2901_v8 = vadd.f32 %v2900_v4, %v2899_v1 }
 0x3c6   :  { %v2518_v17 = vadd.f32 %v2901_v8, %v2847_v3 }
 0x3fd   :  { %v2918_v5 = vpop.f32.mrf.mxu1 }
 0x3ff   :  { %v2919_v6 = vpop.f32.mrf.mxu1 }
 0x400   :  { %v2920_v9 = vadd.f32 %v2919_v6, %v2918_v5 }
 0x401   :  { %v2921_v14 = vpop.f32.mrf.mxu1 }
 0x402   :  { %v2556_v15 = vadd.f32 %v2920_v9, %v2515_v7 }
 0x403   :  { %v2922_v16 = vpop.f32.mrf.mxu1 }
 0x404   :  { %2562 = vst [vmem:[#allocation13] sm:$0xff] %v2556_v15  ;;  %v2923_v18 = vadd.f32 %v2922_v16, %v2921_v14 }
 0x406   :  { %v2559_v19 = vadd.f32 %v2923_v18, %v2518_v17 }
 0x408   :  { %2563 = vst [vmem:[#allocation13 + $0x8] sm:$0xff] %v2559_v19 }
 0x409   :  { %3492 = shalt.err (!%p3489_p6)
}
 0x40a   :  { %s3523_s8 = smov 128   ;;  %s3524_s1 = smov 8  }
 0x40b   :  { %2575 = dma.vmem_to_hbm [thread:$0]  %s2570_s21, 256, %s3671_s9, [#allocation4], %s3523_s8, %s3523_s8, %s3524_s1  }
 0x40c   :  { %3509 = dma.done.wait [#allocation4], 256  }
 0x40d   :  { %3510 = vsyncadd [#allocation4], 4294967040 }
 0x40e   :  { %2579 = vsyncpa [#allocation3], 1 }
 0x40f   :  { %2580 = vsyncpa [#allocation6], 1 }
 0x410   :  { %2581 = vsyncpa [#allocation9], 1 }
 0x411   :  { %2582 = vsyncpa [#allocation12], 1 }
 0x412   :  { %2583 = vsyncpa [#allocation4], 1 }

</bundles_post_ra>
